<compile_context>
chip_gen: v7x
topology: tpu7x:2x2x1
jax: 0.10.0
libtpu: 0.0.40
codegen_flags: <defaults>
</compile_context>

<pallas_src>
import functools

import jax
import jax.numpy as jnp
import numpy as np
from jax import lax
from jax.experimental import pallas as pl
from jax.experimental.pallas import tpu as pltpu


def _roi_pool_kernel(roi_ref, feat_ref, out_ref, *, H, W, PH, PW):
    """One grid step handles one (channel tile, ROI) pair.

    grid = (C_tiles, M): axis 0 = channel tile (outer), axis 1 = ROI (inner).

    roi_ref : SMEM int32 (5, M), rows = [batch_idx, start_w, start_h, end_w, end_h]
    feat_ref: VMEM (1, H, W, TC)  feature-map channel tile of this ROI's image
    out_ref : VMEM (1, PH, PW, TC)
    """
    m = pl.program_id(1)

    start_w = roi_ref[1, m]
    start_h = roi_ref[2, m]
    end_w = roi_ref[3, m]
    end_h = roi_ref[4, m]

    roi_w = jnp.maximum(end_w - start_w + 1, 1)
    roi_h = jnp.maximum(end_h - start_h + 1, 1)
    bin_h = roi_h.astype(jnp.float32) / jnp.float32(PH)
    bin_w = roi_w.astype(jnp.float32) / jnp.float32(PW)

    neg_inf = jnp.array(-jnp.inf, dtype=feat_ref.dtype)

    # Tiny masks; the heavy data (feat tile / row_max) stays lane-dense.
    h_ids = lax.broadcasted_iota(jnp.int32, (H, 1, 1), 0)  # rows
    w_ids = lax.broadcasted_iota(jnp.int32, (W, 1), 0)     # columns

    # PH/PW are small static ints -> unrolled.  Separable reduction:
    #   stage 1 (per ph):      masked max over H -> row_max (W, TC)
    #   stage 2 (per ph, pw):  masked max over W -> (TC,)
    for ph in range(PH):
        hs = jnp.clip(jnp.floor(ph * bin_h).astype(jnp.int32) + start_h, 0, H)
        he = jnp.clip(jnp.ceil((ph + 1) * bin_h).astype(jnp.int32) + start_h, 0, H)
        row_mask = (h_ids >= hs) & (h_ids < he)                              # (H, 1, 1)
        row_max = jnp.max(jnp.where(row_mask, feat_ref[0], neg_inf), axis=0)  # (W, TC)
        for pw in range(PW):
            ws = jnp.clip(jnp.floor(pw * bin_w).astype(jnp.int32) + start_w, 0, W)
            we = jnp.clip(jnp.ceil((pw + 1) * bin_w).astype(jnp.int32) + start_w, 0, W)
            is_empty = jnp.logical_or(he <= hs, we <= ws)   # on clipped bounds
            col_mask = (w_ids >= ws) & (w_ids < we)                           # (W, 1)
            val = jnp.max(jnp.where(col_mask, row_max, neg_inf), axis=0)      # (TC,)
            val = jnp.where(is_empty, jnp.zeros_like(val), val)
            out_ref[0, ph, pw, :] = val


def _choose_channel_tile(c_pad, H, W, itemsize, budget_bytes=6 * 1024 * 1024):
    """Largest multiple-of-128 channel tile dividing c_pad whose (1,H,W,TC)
    block fits the budget (keeps the double-buffered input inside v5e's 16 MiB
    default scoped VMEM and well inside v7x's 64 MiB physical VMEM)."""
    n_lane_groups = c_pad // 128
    for k in range(n_lane_groups, 0, -1):
        if n_lane_groups % k == 0 and H * W * 128 * k * itemsize <= budget_bytes:
            return 128 * k
    return 128


def roi_pooling_2d(x_nchw, rois, output_size, spatial_scale=1.0):
    """Pallas ROI pooling. x_nchw: (N, C, H, W); rois: (M, 5) float."""
    PH, PW = output_size
    N, C, H, W = x_nchw.shape
    M = rois.shape[0]

    # --- ROI coordinates: scale + round-half-up (coords >= 0), as in CUDA. ---
    roi_int = jnp.concatenate(
        [
            rois[:, 0:1].astype(jnp.int32),
            jnp.floor(rois[:, 1:] * spatial_scale + 0.5).astype(jnp.int32),
        ],
        axis=1,
    )  # (M, 5): [batch_idx, start_w, start_h, end_w, end_h]

    # Sort ROIs by batch index so consecutive grid steps reuse the VMEM-resident
    # input block (no re-DMA while the block index is unchanged); unsort after.
    order = jnp.argsort(roi_int[:, 0])
    inv_order = jnp.argsort(order)
    roi_smem = jnp.transpose(roi_int[order], (1, 0))  # (5, M): long axis last (SMEM padding)

    # --- Features: NCHW -> NHWC, keep input dtype, pad C to a multiple of 128. ---
    x_nhwc = jnp.transpose(x_nchw, (0, 2, 3, 1))
    c_pad = ((C + 127) // 128) * 128
    if c_pad != C:
        x_nhwc = jnp.pad(x_nhwc, ((0, 0), (0, 0), (0, 0), (0, c_pad - C)))

    tc = _choose_channel_tile(c_pad, H, W, x_nhwc.dtype.itemsize)
    c_tiles = c_pad // tc

    kernel = functools.partial(_roi_pool_kernel, H=H, W=W, PH=PH, PW=PW)

    out_sorted = pl.pallas_call(
        kernel,
        out_shape=jax.ShapeDtypeStruct((M, PH, PW, c_pad), x_nhwc.dtype),
        grid_spec=pltpu.PrefetchScalarGridSpec(
            num_scalar_prefetch=1,              # ROI table -> SMEM, used in index maps
            grid=(c_tiles, M),                  # channel tiles outer, ROIs inner (reuse)
            in_specs=[
                # Data-dependent block selection: the feature-map channel tile
                # of the batch element referenced by this (sorted) ROI.
                pl.BlockSpec((1, H, W, tc), lambda c, m, roi: (roi[0, m], 0, 0, c)),
            ],
            out_specs=pl.BlockSpec((1, PH, PW, tc), lambda c, m, roi: (m, 0, 0, c)),
        ),
        compiler_params=pltpu.CompilerParams(
            dimension_semantics=("arbitrary", "parallel"),
            vmem_limit_bytes=32 * 1024 * 1024,
        ),
    )(roi_smem, x_nhwc)

    out = jnp.take(out_sorted, inv_order, axis=0)[..., :C]  # undo sort, drop channel pad
    return jnp.transpose(out, (0, 3, 1, 2))                 # (M, C, PH, PW)


class ROIPooling2d:
    """JAX/Pallas equivalent of the PyTorch ROIPooling2d module (no params)."""

    def __init__(self, output_size, spatial_scale=1.0):
        if isinstance(output_size, int):
            output_size = (output_size, output_size)
        self.output_size = tuple(output_size)
        self.spatial_scale = float(spatial_scale)

    def __call__(self, x, rois):
        return roi_pooling_2d(x, rois, self.output_size, self.spatial_scale)


def _roi_pool_reference(x_nchw, rois, output_size, spatial_scale):
    """Pure numpy reference mirroring the Fast R-CNN CUDA kernel."""
    x = np.asarray(x_nchw, dtype=np.float32)
    r = np.asarray(rois, dtype=np.float32)
    N, C, H, W = x.shape
    PH, PW = output_size
    M = r.shape[0]
    out = np.zeros((M, C, PH, PW), np.float32)
    for i in range(M):
        b = int(r[i, 0])
        sw = int(np.floor(r[i, 1] * spatial_scale + 0.5))
        sh = int(np.floor(r[i, 2] * spatial_scale + 0.5))
        ew = int(np.floor(r[i, 3] * spatial_scale + 0.5))
        eh = int(np.floor(r[i, 4] * spatial_scale + 0.5))
        rw = max(ew - sw + 1, 1)
        rh = max(eh - sh + 1, 1)
        bh = np.float32(rh) / np.float32(PH)
        bw = np.float32(rw) / np.float32(PW)
        for ph in range(PH):
            hs = min(max(int(np.floor(np.float32(ph) * bh)) + sh, 0), H)
            he = min(max(int(np.ceil(np.float32(ph + 1) * bh)) + sh, 0), H)
            for pw in range(PW):
                ws = min(max(int(np.floor(np.float32(pw) * bw)) + sw, 0), W)
                we = min(max(int(np.ceil(np.float32(pw + 1) * bw)) + sw, 0), W)
                if he <= hs or we <= ws:
                    out[i, :, ph, pw] = 0.0
                else:
                    out[i, :, ph, pw] = x[b, :, hs:he, ws:we].max(axis=(1, 2))
    return out


if __name__ == "__main__":
    # Small deterministic example: batch=2, channels=32, 16x16 features,
    # 6 ROIs in original-image coordinates (spatial_scale = 0.5 -> image 32x32).
    N, C, H, W = 2, 32, 16, 16
    M = 6
    output_size = (3, 3)
    spatial_scale = 0.5

    key = jax.random.PRNGKey(0)
    kx, kb, k0, ks = jax.random.split(key, 4)

    x = jax.random.normal(kx, (N, C, H, W), dtype=jnp.float32)

    batch_idx = jax.random.randint(kb, (M, 1), 0, N).astype(jnp.float32)
    xy_min = jax.random.randint(k0, (M, 2), 0, 20).astype(jnp.float32)
    size = jax.random.randint(ks, (M, 2), 4, 16).astype(jnp.float32)
    xy_max = jnp.clip(xy_min + size, 0, 31)
    rois = jnp.concatenate([batch_idx, xy_min, xy_max], axis=1)  # (M, 5)

    module = ROIPooling2d(output_size, spatial_scale)
    out = module(x, rois)
    out = jax.block_until_ready(out)

    ref = _roi_pool_reference(x, rois, output_size, spatial_scale)
    np.testing.assert_allclose(np.asarray(out), ref, rtol=1e-6, atol=1e-6)

    assert out.shape == (M, C, output_size[0], output_size[1])
    print("KERNEL_OK")
</pallas_src>

<mosaic_0001>
module attributes {stable_mosaic.version = 11 : i64} {
  func.func @_roi_pool_kernel(%arg0: i32, %arg1: i32, %arg2: memref<5x6xi32, #tpu.memory_space<smem>>, %arg3: memref<1x16x16x128xf32, #tpu.memory_space<vmem>>, %arg4: memref<1x3x3x128xf32, #tpu.memory_space<vmem>>) attributes {dimension_semantics = [#tpu.dimension_semantics<arbitrary>, #tpu.dimension_semantics<parallel>], iteration_bounds = array<i64: 1, 6>, scalar_prefetch = 1 : i64, scratch_operands = 0 : i64, tpu.core_type = #tpu.core_type<tc>, window_params = [{transform_indices = @transform_0, window_bounds = array<i64: 1, 16, 16, 128>}, {transform_indices = @transform_1, window_bounds = array<i64: 1, 3, 3, 128>}]} {
    %c1 = arith.constant 1 : index
    %0 = arith.index_cast %arg1 : i32 to index
    %1 = memref.load %arg2[%c1, %0] : memref<5x6xi32, #tpu.memory_space<smem>>
    %c2 = arith.constant 2 : index
    %2 = arith.index_cast %arg1 : i32 to index
    %3 = memref.load %arg2[%c2, %2] : memref<5x6xi32, #tpu.memory_space<smem>>
    %c3 = arith.constant 3 : index
    %4 = arith.index_cast %arg1 : i32 to index
    %5 = memref.load %arg2[%c3, %4] : memref<5x6xi32, #tpu.memory_space<smem>>
    %c4 = arith.constant 4 : index
    %6 = arith.index_cast %arg1 : i32 to index
    %7 = memref.load %arg2[%c4, %6] : memref<5x6xi32, #tpu.memory_space<smem>>
    %8 = arith.subi %5, %1 : i32
    %c1_i32 = arith.constant 1 : i32
    %9 = arith.addi %8, %c1_i32 : i32
    %c1_i32_0 = arith.constant 1 : i32
    %10 = arith.maxsi %9, %c1_i32_0 : i32
    %11 = arith.subi %7, %3 : i32
    %c1_i32_1 = arith.constant 1 : i32
    %12 = arith.addi %11, %c1_i32_1 : i32
    %c1_i32_2 = arith.constant 1 : i32
    %13 = arith.maxsi %12, %c1_i32_2 : i32
    %14 = arith.sitofp %13 : i32 to f32
    %cst = arith.constant 3.000000e+00 : f32
    %15 = arith.divf %14, %cst : f32
    %16 = arith.sitofp %10 : i32 to f32
    %cst_3 = arith.constant 3.000000e+00 : f32
    %17 = arith.divf %16, %cst_3 : f32
    %18 = tpu.iota {dimensions = array<i32: 0>} : vector<16x1x1xi32>
    %19 = tpu.iota {dimensions = array<i32: 0>} : vector<16x1xi32>
    %cst_4 = arith.constant 0.000000e+00 : f32
    %20 = arith.mulf %cst_4, %15 : f32
    %21 = math.floor %20 : f32
    %22 = arith.fptosi %21 : f32 to i32
    %23 = arith.addi %22, %3 : i32
    %c0_i32 = arith.constant 0 : i32
    %c16_i32 = arith.constant 16 : i32
    %24 = arith.maxsi %c0_i32, %23 : i32
    %25 = arith.minsi %c16_i32, %24 : i32
    %cst_5 = arith.constant 1.000000e+00 : f32
    %26 = arith.mulf %cst_5, %15 : f32
    %27 = math.ceil %26 : f32
    %28 = arith.fptosi %27 : f32 to i32
    %29 = arith.addi %28, %3 : i32
    %c0_i32_6 = arith.constant 0 : i32
    %c16_i32_7 = arith.constant 16 : i32
    %30 = arith.maxsi %c0_i32_6, %29 : i32
    %31 = arith.minsi %c16_i32_7, %30 : i32
    %32 = vector.broadcast %25 : i32 to vector<16x1x1xi32>
    %33 = arith.cmpi sge, %18, %32 : vector<16x1x1xi32>
    %34 = vector.broadcast %31 : i32 to vector<16x1x1xi32>
    %35 = arith.cmpi slt, %18, %34 : vector<16x1x1xi32>
    %36 = arith.andi %33, %35 : vector<16x1x1xi1>
    %c0 = arith.constant 0 : index
    %c0_8 = arith.constant 0 : index
    %c0_9 = arith.constant 0 : index
    %c0_10 = arith.constant 0 : index
    %37 = vector.load %arg3[%c0, %c0_8, %c0_9, %c0_10] : memref<1x16x16x128xf32, #tpu.memory_space<vmem>>, vector<1x16x16x128xf32>
    %38 = vector.shape_cast %37 : vector<1x16x16x128xf32> to vector<16x16x128xf32>
    %cst_11 = arith.constant 0xFF800000 : f32
    %39 = vector.shape_cast %36 : vector<16x1x1xi1> to vector<16x1x1xi1>
    %40 = vector.broadcast %39 : vector<16x1x1xi1> to vector<16x16x128xi1>
    %41 = vector.broadcast %cst_11 : f32 to vector<16x16x128xf32>
    %42 = arith.select %40, %38, %41 : vector<16x16x128xi1>, vector<16x16x128xf32>
    %cst_12 = arith.constant dense<0xFF800000> : vector<16x128xf32>
    %43 = vector.multi_reduction <maximumf>, %42, %cst_12 [0] : vector<16x16x128xf32> to vector<16x128xf32>
    %cst_13 = arith.constant 0.000000e+00 : f32
    %44 = arith.mulf %cst_13, %17 : f32
    %45 = math.floor %44 : f32
    %46 = arith.fptosi %45 : f32 to i32
    %47 = arith.addi %46, %1 : i32
    %c0_i32_14 = arith.constant 0 : i32
    %c16_i32_15 = arith.constant 16 : i32
    %48 = arith.maxsi %c0_i32_14, %47 : i32
    %49 = arith.minsi %c16_i32_15, %48 : i32
    %cst_16 = arith.constant 1.000000e+00 : f32
    %50 = arith.mulf %cst_16, %17 : f32
    %51 = math.ceil %50 : f32
    %52 = arith.fptosi %51 : f32 to i32
    %53 = arith.addi %52, %1 : i32
    %c0_i32_17 = arith.constant 0 : i32
    %c16_i32_18 = arith.constant 16 : i32
    %54 = arith.maxsi %c0_i32_17, %53 : i32
    %55 = arith.minsi %c16_i32_18, %54 : i32
    %56 = arith.cmpi sle, %31, %25 : i32
    %57 = arith.cmpi sle, %55, %49 : i32
    %58 = arith.ori %56, %57 : i1
    %59 = vector.broadcast %49 : i32 to vector<16x1xi32>
    %60 = arith.cmpi sge, %19, %59 : vector<16x1xi32>
    %61 = vector.broadcast %55 : i32 to vector<16x1xi32>
    %62 = arith.cmpi slt, %19, %61 : vector<16x1xi32>
    %63 = arith.andi %60, %62 : vector<16x1xi1>
    %cst_19 = arith.constant 0xFF800000 : f32
    %64 = vector.shape_cast %63 : vector<16x1xi1> to vector<16x1xi1>
    %65 = vector.broadcast %64 : vector<16x1xi1> to vector<16x128xi1>
    %66 = vector.broadcast %cst_19 : f32 to vector<16x128xf32>
    %67 = arith.select %65, %43, %66 : vector<16x128xi1>, vector<16x128xf32>
    %cst_20 = arith.constant dense<0xFF800000> : vector<128xf32>
    %68 = vector.multi_reduction <maximumf>, %67, %cst_20 [0] : vector<16x128xf32> to vector<128xf32>
    %cst_21 = arith.constant 0.000000e+00 : f32
    %69 = vector.broadcast %cst_21 : f32 to vector<128xf32>
    %70 = arith.select %58, %69, %68 : vector<128xf32>
    %c0_22 = arith.constant 0 : index
    %c0_23 = arith.constant 0 : index
    %c0_24 = arith.constant 0 : index
    %c0_25 = arith.constant 0 : index
    %71 = vector.load %arg4[%c0_22, %c0_23, %c0_24, %c0_25] : memref<1x3x3x128xf32, #tpu.memory_space<vmem>>, vector<1x1x1x128xf32>
    %72 = vector.shape_cast %71 : vector<1x1x1x128xf32> to vector<128xf32>
    %73 = vector.shape_cast %70 : vector<128xf32> to vector<1x1x1x128xf32>
    tpu.vector_store %arg4[%c0_22, %c0_23, %c0_24, %c0_25], %73 {strides = array<i32>} : memref<1x3x3x128xf32, #tpu.memory_space<vmem>>, vector<1x1x1x128xf32>,
    %cst_26 = arith.constant 1.000000e+00 : f32
    %74 = arith.mulf %cst_26, %17 : f32
    %75 = math.floor %74 : f32
    %76 = arith.fptosi %75 : f32 to i32
    %77 = arith.addi %76, %1 : i32
    %c0_i32_27 = arith.constant 0 : i32
    %c16_i32_28 = arith.constant 16 : i32
    %78 = arith.maxsi %c0_i32_27, %77 : i32
    %79 = arith.minsi %c16_i32_28, %78 : i32
    %cst_29 = arith.constant 2.000000e+00 : f32
    %80 = arith.mulf %cst_29, %17 : f32
    %81 = math.ceil %80 : f32
    %82 = arith.fptosi %81 : f32 to i32
    %83 = arith.addi %82, %1 : i32
    %c0_i32_30 = arith.constant 0 : i32
    %c16_i32_31 = arith.constant 16 : i32
    %84 = arith.maxsi %c0_i32_30, %83 : i32
    %85 = arith.minsi %c16_i32_31, %84 : i32
    %86 = arith.cmpi sle, %31, %25 : i32
    %87 = arith.cmpi sle, %85, %79 : i32
    %88 = arith.ori %86, %87 : i1
    %89 = vector.broadcast %79 : i32 to vector<16x1xi32>
    %90 = arith.cmpi sge, %19, %89 : vector<16x1xi32>
    %91 = vector.broadcast %85 : i32 to vector<16x1xi32>
    %92 = arith.cmpi slt, %19, %91 : vector<16x1xi32>
    %93 = arith.andi %90, %92 : vector<16x1xi1>
    %cst_32 = arith.constant 0xFF800000 : f32
    %94 = vector.shape_cast %93 : vector<16x1xi1> to vector<16x1xi1>
    %95 = vector.broadcast %94 : vector<16x1xi1> to vector<16x128xi1>
    %96 = vector.broadcast %cst_32 : f32 to vector<16x128xf32>
    %97 = arith.select %95, %43, %96 : vector<16x128xi1>, vector<16x128xf32>
    %cst_33 = arith.constant dense<0xFF800000> : vector<128xf32>
    %98 = vector.multi_reduction <maximumf>, %97, %cst_33 [0] : vector<16x128xf32> to vector<128xf32>
    %cst_34 = arith.constant 0.000000e+00 : f32
    %99 = vector.broadcast %cst_34 : f32 to vector<128xf32>
    %100 = arith.select %88, %99, %98 : vector<128xf32>
    %c0_35 = arith.constant 0 : index
    %c0_36 = arith.constant 0 : index
    %c1_37 = arith.constant 1 : index
    %c0_38 = arith.constant 0 : index
    %101 = vector.load %arg4[%c0_35, %c0_36, %c1_37, %c0_38] : memref<1x3x3x128xf32, #tpu.memory_space<vmem>>, vector<1x1x1x128xf32>
    %102 = vector.shape_cast %101 : vector<1x1x1x128xf32> to vector<128xf32>
    %103 = vector.shape_cast %100 : vector<128xf32> to vector<1x1x1x128xf32>
    tpu.vector_store %arg4[%c0_35, %c0_36, %c1_37, %c0_38], %103 {strides = array<i32>} : memref<1x3x3x128xf32, #tpu.memory_space<vmem>>, vector<1x1x1x128xf32>,
    %cst_39 = arith.constant 2.000000e+00 : f32
    %104 = arith.mulf %cst_39, %17 : f32
    %105 = math.floor %104 : f32
    %106 = arith.fptosi %105 : f32 to i32
    %107 = arith.addi %106, %1 : i32
    %c0_i32_40 = arith.constant 0 : i32
    %c16_i32_41 = arith.constant 16 : i32
    %108 = arith.maxsi %c0_i32_40, %107 : i32
    %109 = arith.minsi %c16_i32_41, %108 : i32
    %cst_42 = arith.constant 3.000000e+00 : f32
    %110 = arith.mulf %cst_42, %17 : f32
    %111 = math.ceil %110 : f32
    %112 = arith.fptosi %111 : f32 to i32
    %113 = arith.addi %112, %1 : i32
    %c0_i32_43 = arith.constant 0 : i32
    %c16_i32_44 = arith.constant 16 : i32
    %114 = arith.maxsi %c0_i32_43, %113 : i32
    %115 = arith.minsi %c16_i32_44, %114 : i32
    %116 = arith.cmpi sle, %31, %25 : i32
    %117 = arith.cmpi sle, %115, %109 : i32
    %118 = arith.ori %116, %117 : i1
    %119 = vector.broadcast %109 : i32 to vector<16x1xi32>
    %120 = arith.cmpi sge, %19, %119 : vector<16x1xi32>
    %121 = vector.broadcast %115 : i32 to vector<16x1xi32>
    %122 = arith.cmpi slt, %19, %121 : vector<16x1xi32>
    %123 = arith.andi %120, %122 : vector<16x1xi1>
    %cst_45 = arith.constant 0xFF800000 : f32
    %124 = vector.shape_cast %123 : vector<16x1xi1> to vector<16x1xi1>
    %125 = vector.broadcast %124 : vector<16x1xi1> to vector<16x128xi1>
    %126 = vector.broadcast %cst_45 : f32 to vector<16x128xf32>
    %127 = arith.select %125, %43, %126 : vector<16x128xi1>, vector<16x128xf32>
    %cst_46 = arith.constant dense<0xFF800000> : vector<128xf32>
    %128 = vector.multi_reduction <maximumf>, %127, %cst_46 [0] : vector<16x128xf32> to vector<128xf32>
    %cst_47 = arith.constant 0.000000e+00 : f32
    %129 = vector.broadcast %cst_47 : f32 to vector<128xf32>
    %130 = arith.select %118, %129, %128 : vector<128xf32>
    %c0_48 = arith.constant 0 : index
    %c0_49 = arith.constant 0 : index
    %c2_50 = arith.constant 2 : index
    %c0_51 = arith.constant 0 : index
    %131 = vector.load %arg4[%c0_48, %c0_49, %c2_50, %c0_51] : memref<1x3x3x128xf32, #tpu.memory_space<vmem>>, vector<1x1x1x128xf32>
    %132 = vector.shape_cast %131 : vector<1x1x1x128xf32> to vector<128xf32>
    %133 = vector.shape_cast %130 : vector<128xf32> to vector<1x1x1x128xf32>
    tpu.vector_store %arg4[%c0_48, %c0_49, %c2_50, %c0_51], %133 {strides = array<i32>} : memref<1x3x3x128xf32, #tpu.memory_space<vmem>>, vector<1x1x1x128xf32>,
    %cst_52 = arith.constant 1.000000e+00 : f32
    %134 = arith.mulf %cst_52, %15 : f32
    %135 = math.floor %134 : f32
    %136 = arith.fptosi %135 : f32 to i32
    %137 = arith.addi %136, %3 : i32
    %c0_i32_53 = arith.constant 0 : i32
    %c16_i32_54 = arith.constant 16 : i32
    %138 = arith.maxsi %c0_i32_53, %137 : i32
    %139 = arith.minsi %c16_i32_54, %138 : i32
    %cst_55 = arith.constant 2.000000e+00 : f32
    %140 = arith.mulf %cst_55, %15 : f32
    %141 = math.ceil %140 : f32
    %142 = arith.fptosi %141 : f32 to i32
    %143 = arith.addi %142, %3 : i32
    %c0_i32_56 = arith.constant 0 : i32
    %c16_i32_57 = arith.constant 16 : i32
    %144 = arith.maxsi %c0_i32_56, %143 : i32
    %145 = arith.minsi %c16_i32_57, %144 : i32
    %146 = vector.broadcast %139 : i32 to vector<16x1x1xi32>
    %147 = arith.cmpi sge, %18, %146 : vector<16x1x1xi32>
    %148 = vector.broadcast %145 : i32 to vector<16x1x1xi32>
    %149 = arith.cmpi slt, %18, %148 : vector<16x1x1xi32>
    %150 = arith.andi %147, %149 : vector<16x1x1xi1>
    %c0_58 = arith.constant 0 : index
    %c0_59 = arith.constant 0 : index
    %c0_60 = arith.constant 0 : index
    %c0_61 = arith.constant 0 : index
    %151 = vector.load %arg3[%c0_58, %c0_59, %c0_60, %c0_61] : memref<1x16x16x128xf32, #tpu.memory_space<vmem>>, vector<1x16x16x128xf32>
    %152 = vector.shape_cast %151 : vector<1x16x16x128xf32> to vector<16x16x128xf32>
    %cst_62 = arith.constant 0xFF800000 : f32
    %153 = vector.shape_cast %150 : vector<16x1x1xi1> to vector<16x1x1xi1>
    %154 = vector.broadcast %153 : vector<16x1x1xi1> to vector<16x16x128xi1>
    %155 = vector.broadcast %cst_62 : f32 to vector<16x16x128xf32>
    %156 = arith.select %154, %152, %155 : vector<16x16x128xi1>, vector<16x16x128xf32>
    %cst_63 = arith.constant dense<0xFF800000> : vector<16x128xf32>
    %157 = vector.multi_reduction <maximumf>, %156, %cst_63 [0] : vector<16x16x128xf32> to vector<16x128xf32>
    %cst_64 = arith.constant 0.000000e+00 : f32
    %158 = arith.mulf %cst_64, %17 : f32
    %159 = math.floor %158 : f32
    %160 = arith.fptosi %159 : f32 to i32
    %161 = arith.addi %160, %1 : i32
    %c0_i32_65 = arith.constant 0 : i32
    %c16_i32_66 = arith.constant 16 : i32
    %162 = arith.maxsi %c0_i32_65, %161 : i32
    %163 = arith.minsi %c16_i32_66, %162 : i32
    %cst_67 = arith.constant 1.000000e+00 : f32
    %164 = arith.mulf %cst_67, %17 : f32
    %165 = math.ceil %164 : f32
    %166 = arith.fptosi %165 : f32 to i32
    %167 = arith.addi %166, %1 : i32
    %c0_i32_68 = arith.constant 0 : i32
    %c16_i32_69 = arith.constant 16 : i32
    %168 = arith.maxsi %c0_i32_68, %167 : i32
    %169 = arith.minsi %c16_i32_69, %168 : i32
    %170 = arith.cmpi sle, %145, %139 : i32
    %171 = arith.cmpi sle, %169, %163 : i32
    %172 = arith.ori %170, %171 : i1
    %173 = vector.broadcast %163 : i32 to vector<16x1xi32>
    %174 = arith.cmpi sge, %19, %173 : vector<16x1xi32>
    %175 = vector.broadcast %169 : i32 to vector<16x1xi32>
    %176 = arith.cmpi slt, %19, %175 : vector<16x1xi32>
    %177 = arith.andi %174, %176 : vector<16x1xi1>
    %cst_70 = arith.constant 0xFF800000 : f32
    %178 = vector.shape_cast %177 : vector<16x1xi1> to vector<16x1xi1>
    %179 = vector.broadcast %178 : vector<16x1xi1> to vector<16x128xi1>
    %180 = vector.broadcast %cst_70 : f32 to vector<16x128xf32>
    %181 = arith.select %179, %157, %180 : vector<16x128xi1>, vector<16x128xf32>
    %cst_71 = arith.constant dense<0xFF800000> : vector<128xf32>
    %182 = vector.multi_reduction <maximumf>, %181, %cst_71 [0] : vector<16x128xf32> to vector<128xf32>
    %cst_72 = arith.constant 0.000000e+00 : f32
    %183 = vector.broadcast %cst_72 : f32 to vector<128xf32>
    %184 = arith.select %172, %183, %182 : vector<128xf32>
    %c0_73 = arith.constant 0 : index
    %c1_74 = arith.constant 1 : index
    %c0_75 = arith.constant 0 : index
    %c0_76 = arith.constant 0 : index
    %185 = vector.load %arg4[%c0_73, %c1_74, %c0_75, %c0_76] : memref<1x3x3x128xf32, #tpu.memory_space<vmem>>, vector<1x1x1x128xf32>
    %186 = vector.shape_cast %185 : vector<1x1x1x128xf32> to vector<128xf32>
    %187 = vector.shape_cast %184 : vector<128xf32> to vector<1x1x1x128xf32>
    tpu.vector_store %arg4[%c0_73, %c1_74, %c0_75, %c0_76], %187 {strides = array<i32>} : memref<1x3x3x128xf32, #tpu.memory_space<vmem>>, vector<1x1x1x128xf32>,
    %cst_77 = arith.constant 1.000000e+00 : f32
    %188 = arith.mulf %cst_77, %17 : f32
    %189 = math.floor %188 : f32
    %190 = arith.fptosi %189 : f32 to i32
    %191 = arith.addi %190, %1 : i32
    %c0_i32_78 = arith.constant 0 : i32
    %c16_i32_79 = arith.constant 16 : i32
    %192 = arith.maxsi %c0_i32_78, %191 : i32
    %193 = arith.minsi %c16_i32_79, %192 : i32
    %cst_80 = arith.constant 2.000000e+00 : f32
    %194 = arith.mulf %cst_80, %17 : f32
    %195 = math.ceil %194 : f32
    %196 = arith.fptosi %195 : f32 to i32
    %197 = arith.addi %196, %1 : i32
    %c0_i32_81 = arith.constant 0 : i32
    %c16_i32_82 = arith.constant 16 : i32
    %198 = arith.maxsi %c0_i32_81, %197 : i32
    %199 = arith.minsi %c16_i32_82, %198 : i32
    %200 = arith.cmpi sle, %145, %139 : i32
    %201 = arith.cmpi sle, %199, %193 : i32
    %202 = arith.ori %200, %201 : i1
    %203 = vector.broadcast %193 : i32 to vector<16x1xi32>
    %204 = arith.cmpi sge, %19, %203 : vector<16x1xi32>
    %205 = vector.broadcast %199 : i32 to vector<16x1xi32>
    %206 = arith.cmpi slt, %19, %205 : vector<16x1xi32>
    %207 = arith.andi %204, %206 : vector<16x1xi1>
    %cst_83 = arith.constant 0xFF800000 : f32
    %208 = vector.shape_cast %207 : vector<16x1xi1> to vector<16x1xi1>
    %209 = vector.broadcast %208 : vector<16x1xi1> to vector<16x128xi1>
    %210 = vector.broadcast %cst_83 : f32 to vector<16x128xf32>
    %211 = arith.select %209, %157, %210 : vector<16x128xi1>, vector<16x128xf32>
    %cst_84 = arith.constant dense<0xFF800000> : vector<128xf32>
    %212 = vector.multi_reduction <maximumf>, %211, %cst_84 [0] : vector<16x128xf32> to vector<128xf32>
    %cst_85 = arith.constant 0.000000e+00 : f32
    %213 = vector.broadcast %cst_85 : f32 to vector<128xf32>
    %214 = arith.select %202, %213, %212 : vector<128xf32>
    %c0_86 = arith.constant 0 : index
    %c1_87 = arith.constant 1 : index
    %c1_88 = arith.constant 1 : index
    %c0_89 = arith.constant 0 : index
    %215 = vector.load %arg4[%c0_86, %c1_87, %c1_88, %c0_89] : memref<1x3x3x128xf32, #tpu.memory_space<vmem>>, vector<1x1x1x128xf32>
    %216 = vector.shape_cast %215 : vector<1x1x1x128xf32> to vector<128xf32>
    %217 = vector.shape_cast %214 : vector<128xf32> to vector<1x1x1x128xf32>
    tpu.vector_store %arg4[%c0_86, %c1_87, %c1_88, %c0_89], %217 {strides = array<i32>} : memref<1x3x3x128xf32, #tpu.memory_space<vmem>>, vector<1x1x1x128xf32>,
    %cst_90 = arith.constant 2.000000e+00 : f32
    %218 = arith.mulf %cst_90, %17 : f32
    %219 = math.floor %218 : f32
    %220 = arith.fptosi %219 : f32 to i32
    %221 = arith.addi %220, %1 : i32
    %c0_i32_91 = arith.constant 0 : i32
    %c16_i32_92 = arith.constant 16 : i32
    %222 = arith.maxsi %c0_i32_91, %221 : i32
    %223 = arith.minsi %c16_i32_92, %222 : i32
    %cst_93 = arith.constant 3.000000e+00 : f32
    %224 = arith.mulf %cst_93, %17 : f32
    %225 = math.ceil %224 : f32
    %226 = arith.fptosi %225 : f32 to i32
    %227 = arith.addi %226, %1 : i32
    %c0_i32_94 = arith.constant 0 : i32
    %c16_i32_95 = arith.constant 16 : i32
    %228 = arith.maxsi %c0_i32_94, %227 : i32
    %229 = arith.minsi %c16_i32_95, %228 : i32
    %230 = arith.cmpi sle, %145, %139 : i32
    %231 = arith.cmpi sle, %229, %223 : i32
    %232 = arith.ori %230, %231 : i1
    %233 = vector.broadcast %223 : i32 to vector<16x1xi32>
    %234 = arith.cmpi sge, %19, %233 : vector<16x1xi32>
    %235 = vector.broadcast %229 : i32 to vector<16x1xi32>
    %236 = arith.cmpi slt, %19, %235 : vector<16x1xi32>
    %237 = arith.andi %234, %236 : vector<16x1xi1>
    %cst_96 = arith.constant 0xFF800000 : f32
    %238 = vector.shape_cast %237 : vector<16x1xi1> to vector<16x1xi1>
    %239 = vector.broadcast %238 : vector<16x1xi1> to vector<16x128xi1>
    %240 = vector.broadcast %cst_96 : f32 to vector<16x128xf32>
    %241 = arith.select %239, %157, %240 : vector<16x128xi1>, vector<16x128xf32>
    %cst_97 = arith.constant dense<0xFF800000> : vector<128xf32>
    %242 = vector.multi_reduction <maximumf>, %241, %cst_97 [0] : vector<16x128xf32> to vector<128xf32>
    %cst_98 = arith.constant 0.000000e+00 : f32
    %243 = vector.broadcast %cst_98 : f32 to vector<128xf32>
    %244 = arith.select %232, %243, %242 : vector<128xf32>
    %c0_99 = arith.constant 0 : index
    %c1_100 = arith.constant 1 : index
    %c2_101 = arith.constant 2 : index
    %c0_102 = arith.constant 0 : index
    %245 = vector.load %arg4[%c0_99, %c1_100, %c2_101, %c0_102] : memref<1x3x3x128xf32, #tpu.memory_space<vmem>>, vector<1x1x1x128xf32>
    %246 = vector.shape_cast %245 : vector<1x1x1x128xf32> to vector<128xf32>
    %247 = vector.shape_cast %244 : vector<128xf32> to vector<1x1x1x128xf32>
    tpu.vector_store %arg4[%c0_99, %c1_100, %c2_101, %c0_102], %247 {strides = array<i32>} : memref<1x3x3x128xf32, #tpu.memory_space<vmem>>, vector<1x1x1x128xf32>,
    %cst_103 = arith.constant 2.000000e+00 : f32
    %248 = arith.mulf %cst_103, %15 : f32
    %249 = math.floor %248 : f32
    %250 = arith.fptosi %249 : f32 to i32
    %251 = arith.addi %250, %3 : i32
    %c0_i32_104 = arith.constant 0 : i32
    %c16_i32_105 = arith.constant 16 : i32
    %252 = arith.maxsi %c0_i32_104, %251 : i32
    %253 = arith.minsi %c16_i32_105, %252 : i32
    %cst_106 = arith.constant 3.000000e+00 : f32
    %254 = arith.mulf %cst_106, %15 : f32
    %255 = math.ceil %254 : f32
    %256 = arith.fptosi %255 : f32 to i32
    %257 = arith.addi %256, %3 : i32
    %c0_i32_107 = arith.constant 0 : i32
    %c16_i32_108 = arith.constant 16 : i32
    %258 = arith.maxsi %c0_i32_107, %257 : i32
    %259 = arith.minsi %c16_i32_108, %258 : i32
    %260 = vector.broadcast %253 : i32 to vector<16x1x1xi32>
    %261 = arith.cmpi sge, %18, %260 : vector<16x1x1xi32>
    %262 = vector.broadcast %259 : i32 to vector<16x1x1xi32>
    %263 = arith.cmpi slt, %18, %262 : vector<16x1x1xi32>
    %264 = arith.andi %261, %263 : vector<16x1x1xi1>
    %c0_109 = arith.constant 0 : index
    %c0_110 = arith.constant 0 : index
    %c0_111 = arith.constant 0 : index
    %c0_112 = arith.constant 0 : index
    %265 = vector.load %arg3[%c0_109, %c0_110, %c0_111, %c0_112] : memref<1x16x16x128xf32, #tpu.memory_space<vmem>>, vector<1x16x16x128xf32>
    %266 = vector.shape_cast %265 : vector<1x16x16x128xf32> to vector<16x16x128xf32>
    %cst_113 = arith.constant 0xFF800000 : f32
    %267 = vector.shape_cast %264 : vector<16x1x1xi1> to vector<16x1x1xi1>
    %268 = vector.broadcast %267 : vector<16x1x1xi1> to vector<16x16x128xi1>
    %269 = vector.broadcast %cst_113 : f32 to vector<16x16x128xf32>
    %270 = arith.select %268, %266, %269 : vector<16x16x128xi1>, vector<16x16x128xf32>
    %cst_114 = arith.constant dense<0xFF800000> : vector<16x128xf32>
    %271 = vector.multi_reduction <maximumf>, %270, %cst_114 [0] : vector<16x16x128xf32> to vector<16x128xf32>
    %cst_115 = arith.constant 0.000000e+00 : f32
    %272 = arith.mulf %cst_115, %17 : f32
    %273 = math.floor %272 : f32
    %274 = arith.fptosi %273 : f32 to i32
    %275 = arith.addi %274, %1 : i32
    %c0_i32_116 = arith.constant 0 : i32
    %c16_i32_117 = arith.constant 16 : i32
    %276 = arith.maxsi %c0_i32_116, %275 : i32
    %277 = arith.minsi %c16_i32_117, %276 : i32
    %cst_118 = arith.constant 1.000000e+00 : f32
    %278 = arith.mulf %cst_118, %17 : f32
    %279 = math.ceil %278 : f32
    %280 = arith.fptosi %279 : f32 to i32
    %281 = arith.addi %280, %1 : i32
    %c0_i32_119 = arith.constant 0 : i32
    %c16_i32_120 = arith.constant 16 : i32
    %282 = arith.maxsi %c0_i32_119, %281 : i32
    %283 = arith.minsi %c16_i32_120, %282 : i32
    %284 = arith.cmpi sle, %259, %253 : i32
    %285 = arith.cmpi sle, %283, %277 : i32
    %286 = arith.ori %284, %285 : i1
    %287 = vector.broadcast %277 : i32 to vector<16x1xi32>
    %288 = arith.cmpi sge, %19, %287 : vector<16x1xi32>
    %289 = vector.broadcast %283 : i32 to vector<16x1xi32>
    %290 = arith.cmpi slt, %19, %289 : vector<16x1xi32>
    %291 = arith.andi %288, %290 : vector<16x1xi1>
    %cst_121 = arith.constant 0xFF800000 : f32
    %292 = vector.shape_cast %291 : vector<16x1xi1> to vector<16x1xi1>
    %293 = vector.broadcast %292 : vector<16x1xi1> to vector<16x128xi1>
    %294 = vector.broadcast %cst_121 : f32 to vector<16x128xf32>
    %295 = arith.select %293, %271, %294 : vector<16x128xi1>, vector<16x128xf32>
    %cst_122 = arith.constant dense<0xFF800000> : vector<128xf32>
    %296 = vector.multi_reduction <maximumf>, %295, %cst_122 [0] : vector<16x128xf32> to vector<128xf32>
    %cst_123 = arith.constant 0.000000e+00 : f32
    %297 = vector.broadcast %cst_123 : f32 to vector<128xf32>
    %298 = arith.select %286, %297, %296 : vector<128xf32>
    %c0_124 = arith.constant 0 : index
    %c2_125 = arith.constant 2 : index
    %c0_126 = arith.constant 0 : index
    %c0_127 = arith.constant 0 : index
    %299 = vector.load %arg4[%c0_124, %c2_125, %c0_126, %c0_127] : memref<1x3x3x128xf32, #tpu.memory_space<vmem>>, vector<1x1x1x128xf32>
    %300 = vector.shape_cast %299 : vector<1x1x1x128xf32> to vector<128xf32>
    %301 = vector.shape_cast %298 : vector<128xf32> to vector<1x1x1x128xf32>
    tpu.vector_store %arg4[%c0_124, %c2_125, %c0_126, %c0_127], %301 {strides = array<i32>} : memref<1x3x3x128xf32, #tpu.memory_space<vmem>>, vector<1x1x1x128xf32>,
    %cst_128 = arith.constant 1.000000e+00 : f32
    %302 = arith.mulf %cst_128, %17 : f32
    %303 = math.floor %302 : f32
    %304 = arith.fptosi %303 : f32 to i32
    %305 = arith.addi %304, %1 : i32
    %c0_i32_129 = arith.constant 0 : i32
    %c16_i32_130 = arith.constant 16 : i32
    %306 = arith.maxsi %c0_i32_129, %305 : i32
    %307 = arith.minsi %c16_i32_130, %306 : i32
    %cst_131 = arith.constant 2.000000e+00 : f32
    %308 = arith.mulf %cst_131, %17 : f32
    %309 = math.ceil %308 : f32
    %310 = arith.fptosi %309 : f32 to i32
    %311 = arith.addi %310, %1 : i32
    %c0_i32_132 = arith.constant 0 : i32
    %c16_i32_133 = arith.constant 16 : i32
    %312 = arith.maxsi %c0_i32_132, %311 : i32
    %313 = arith.minsi %c16_i32_133, %312 : i32
    %314 = arith.cmpi sle, %259, %253 : i32
    %315 = arith.cmpi sle, %313, %307 : i32
    %316 = arith.ori %314, %315 : i1
    %317 = vector.broadcast %307 : i32 to vector<16x1xi32>
    %318 = arith.cmpi sge, %19, %317 : vector<16x1xi32>
    %319 = vector.broadcast %313 : i32 to vector<16x1xi32>
    %320 = arith.cmpi slt, %19, %319 : vector<16x1xi32>
    %321 = arith.andi %318, %320 : vector<16x1xi1>
    %cst_134 = arith.constant 0xFF800000 : f32
    %322 = vector.shape_cast %321 : vector<16x1xi1> to vector<16x1xi1>
    %323 = vector.broadcast %322 : vector<16x1xi1> to vector<16x128xi1>
    %324 = vector.broadcast %cst_134 : f32 to vector<16x128xf32>
    %325 = arith.select %323, %271, %324 : vector<16x128xi1>, vector<16x128xf32>
    %cst_135 = arith.constant dense<0xFF800000> : vector<128xf32>
    %326 = vector.multi_reduction <maximumf>, %325, %cst_135 [0] : vector<16x128xf32> to vector<128xf32>
    %cst_136 = arith.constant 0.000000e+00 : f32
    %327 = vector.broadcast %cst_136 : f32 to vector<128xf32>
    %328 = arith.select %316, %327, %326 : vector<128xf32>
    %c0_137 = arith.constant 0 : index
    %c2_138 = arith.constant 2 : index
    %c1_139 = arith.constant 1 : index
    %c0_140 = arith.constant 0 : index
    %329 = vector.load %arg4[%c0_137, %c2_138, %c1_139, %c0_140] : memref<1x3x3x128xf32, #tpu.memory_space<vmem>>, vector<1x1x1x128xf32>
    %330 = vector.shape_cast %329 : vector<1x1x1x128xf32> to vector<128xf32>
    %331 = vector.shape_cast %328 : vector<128xf32> to vector<1x1x1x128xf32>
    tpu.vector_store %arg4[%c0_137, %c2_138, %c1_139, %c0_140], %331 {strides = array<i32>} : memref<1x3x3x128xf32, #tpu.memory_space<vmem>>, vector<1x1x1x128xf32>,
    %cst_141 = arith.constant 2.000000e+00 : f32
    %332 = arith.mulf %cst_141, %17 : f32
    %333 = math.floor %332 : f32
    %334 = arith.fptosi %333 : f32 to i32
    %335 = arith.addi %334, %1 : i32
    %c0_i32_142 = arith.constant 0 : i32
    %c16_i32_143 = arith.constant 16 : i32
    %336 = arith.maxsi %c0_i32_142, %335 : i32
    %337 = arith.minsi %c16_i32_143, %336 : i32
    %cst_144 = arith.constant 3.000000e+00 : f32
    %338 = arith.mulf %cst_144, %17 : f32
    %339 = math.ceil %338 : f32
    %340 = arith.fptosi %339 : f32 to i32
    %341 = arith.addi %340, %1 : i32
    %c0_i32_145 = arith.constant 0 : i32
    %c16_i32_146 = arith.constant 16 : i32
    %342 = arith.maxsi %c0_i32_145, %341 : i32
    %343 = arith.minsi %c16_i32_146, %342 : i32
    %344 = arith.cmpi sle, %259, %253 : i32
    %345 = arith.cmpi sle, %343, %337 : i32
    %346 = arith.ori %344, %345 : i1
    %347 = vector.broadcast %337 : i32 to vector<16x1xi32>
    %348 = arith.cmpi sge, %19, %347 : vector<16x1xi32>
    %349 = vector.broadcast %343 : i32 to vector<16x1xi32>
    %350 = arith.cmpi slt, %19, %349 : vector<16x1xi32>
    %351 = arith.andi %348, %350 : vector<16x1xi1>
    %cst_147 = arith.constant 0xFF800000 : f32
    %352 = vector.shape_cast %351 : vector<16x1xi1> to vector<16x1xi1>
    %353 = vector.broadcast %352 : vector<16x1xi1> to vector<16x128xi1>
    %354 = vector.broadcast %cst_147 : f32 to vector<16x128xf32>
    %355 = arith.select %353, %271, %354 : vector<16x128xi1>, vector<16x128xf32>
    %cst_148 = arith.constant dense<0xFF800000> : vector<128xf32>
    %356 = vector.multi_reduction <maximumf>, %355, %cst_148 [0] : vector<16x128xf32> to vector<128xf32>
    %cst_149 = arith.constant 0.000000e+00 : f32
    %357 = vector.broadcast %cst_149 : f32 to vector<128xf32>
    %358 = arith.select %346, %357, %356 : vector<128xf32>
    %c0_150 = arith.constant 0 : index
    %c2_151 = arith.constant 2 : index
    %c2_152 = arith.constant 2 : index
    %c0_153 = arith.constant 0 : index
    %359 = vector.load %arg4[%c0_150, %c2_151, %c2_152, %c0_153] : memref<1x3x3x128xf32, #tpu.memory_space<vmem>>, vector<1x1x1x128xf32>
    %360 = vector.shape_cast %359 : vector<1x1x1x128xf32> to vector<128xf32>
    %361 = vector.shape_cast %358 : vector<128xf32> to vector<1x1x1x128xf32>
    tpu.vector_store %arg4[%c0_150, %c2_151, %c2_152, %c0_153], %361 {strides = array<i32>} : memref<1x3x3x128xf32, #tpu.memory_space<vmem>>, vector<1x1x1x128xf32>,
    return
  }
  func.func @transform_0(%arg0: i32, %arg1: i32, %arg2: memref<5x6xi32, #tpu.memory_space<smem>>) -> (i32, i32, i32, i32) {
    %c0 = arith.constant 0 : index
    %0 = arith.index_cast %arg1 : i32 to index
    %1 = memref.load %arg2[%c0, %0] : memref<5x6xi32, #tpu.memory_space<smem>>
    %c0_i32 = arith.constant 0 : i32
    %c0_i32_0 = arith.constant 0 : i32
    %c0_i32_1 = arith.constant 0 : i32
    return %1, %c0_i32, %c0_i32_0, %arg0 : i32, i32, i32, i32
  }
  func.func @transform_1(%arg0: i32, %arg1: i32, %arg2: memref<5x6xi32, #tpu.memory_space<smem>>) -> (i32, i32, i32, i32) {
    %c0_i32 = arith.constant 0 : i32
    %c0_i32_0 = arith.constant 0 : i32
    %c0_i32_1 = arith.constant 0 : i32
    return %arg1, %c0_i32, %c0_i32_0, %arg0 : i32, i32, i32, i32
  }
}

</mosaic_0001>

<bundles_post_ra>
// kernel: tpu_custom_call.1
= control target key start
LH: loop header
LB: loop body
LE: loop exit
PB: predicated region body
PF: predicated region fallthrough
CT: control target
= control target key end

     0   :  { %s3008_s0 = inlined_call_operand.hbm [shape: s32[5,6], index: 0, kind: input, shape index: {}]   ;;  %s3009_s1 = inlined_call_operand.hbm [shape: f32[2,16,16,128], index: 1, kind: input, shape index: {}]   ;;  %s3010_s2 = inlined_call_operand.hbm [shape: f32[6,3,3,128], index: 2, kind: output, shape index: {}]  }
   0x1   :  { %3023 = sst [smem:[#allocation17_spill]] %s3009_s1  ;;  %s1333_s11 = scalar_lea.hbm %s3008_s0, 128 }
   0x2   :  { %p1334_p0 = scmp.ne.s32.totalorder %s3008_s0, %s1333_s11  ;;  %p1337_p1 = scmp.lt.u32.totalorder %s1333_s11, %s3008_s0 }
   0x4   :  { %p1339_p2 = pnand %p1337_p1, %p1334_p0 }
   0x6   :  { %1342 = shalt.err (!%p1339_p2)  }
   0x7   :  { %s1483_s16 = smov [#allocation3]  }
   0x8   :  { %8 = dma.hbm_to_smem %s3008_s0, 128, %s1483_s16, [#allocation2] }
   0x9   :  { %1437 = dma.done.wait [#allocation2], 128 }
   0xa   :  { %1438 = vsyncadd [#allocation2], 4294967168 }
   0xb   :  { %10 = sfence }
   0xc   :  { %11 = vsyncpa [#allocation5], 0 }
   0xd   :  { %13 = vsyncpa [#allocation5 + $0x1], 0 }
   0xe   :  { %14 = vsyncpa [#allocation6], 0 }
   0xf   :  { %16 = vsyncpa [#allocation6 + $0x1], 0  ;;  %s1517_s19 = smov 0   ;;  %s1519_s20 = smov 0  }
  0x10   :  { %s1521_s21 = smov 0   ;;  %s1523_s22 = smov 0  }
  0x11   :  { %s1525_s23 = smov 0   ;;  %s1527_s24 = smov 0  }
  0x12   :  { %s1529_s0 = smov 0   ;;  %s1531_s25 = smov 0  }
  0x13   :  { %s1533_s26 = smov 0  }
  0x14 LB: > { %3024 = sst [smem:[#allocation13_spill]] %s1469_s24  ;;  %s1097_s27 = sadd.s32 4294967295, %s1481_s26   ;;  %s1481_s26 = sphi %s1533_s26, %s22_s26   ;;  %s1477_s25 = sphi %s1531_s25, %s3242_s25   ;;  %s1473_s0 = sphi %s1529_s0, %s3241_s0   ;;  %s1469_s24 = sphi %s1527_s24, %s3240_s24   ;;  %s1465_s23 = sphi %s1525_s23, %s3247_s23   ;;  %s1461_s22 = sphi %s1523_s22, %s3246_s22   ;;  %s1457_s21 = sphi %s1521_s21, %s3245_s21   ;;  %s1453_s20 = sphi %s1519_s20, %s3244_s20   ;;  %s1449_s19 = sphi %s1517_s19, %s3243_s19  }
  0x15   : > { %3025 = sst [smem:[#allocation14_spill]] %s1477_s25  ;;  %s1098_s28 = sadd.s32 4294967294, %s1481_s26  }
  0x16   : > { %s31_s29 = sadd.s32 1, %s1477_s25  ;;  %s38_s30 = sld [smem:[#allocation3 + %s1477_s25]] }
  0x17   : > { %p32_p3 = scmp.ge.s32.totalorder %s31_s29, 6  ;;  %s45_s3 = sadd.s32 1, %s1469_s24 }
  0x18   : > { %p52_p4 = scmp.ne.s32.totalorder %s1469_s24, %s1465_s23  ;;  %p53_p5 = scmp.eq.s32.totalorder %s1481_s26, 0 }
  0x19   : > { %s3249_s29 = smov (%p32_p3, %s31_s29), 0  ;;  %p58_p7 = scmp.ne.s32.totalorder %s1465_s23, %s1461_s22 }
  0x1a   : > { %3026 = sst [smem:[#allocation15_spill]] %s3249_s29  ;;  %p1570_p6 = por %p53_p5, %p52_p4 }
  0x1b   : > { %s39_s5 = sld [smem:[#allocation3 + %s3249_s29]]  ;;  %p59_p8 = scmp.eq.s32.totalorder %s1097_s27, 0 }
  0x1c   : > { %s68_s6 = ssub.s32 %s1477_s25, %s3249_s29  ;;  %s73_s7 = sadd.s32 1, %s1457_s21 }
  0x1d   : > { %p1579_p9 = por %p59_p8, %p58_p7  ;;  %p71_p10 = scmp.eq.s32.totalorder %s68_s6, 0 }
  0x1e   : > { %p83_p11 = scmp.ne.s32.totalorder %s1457_s21, %s1453_s20  ;;  %p84_p12 = scmp.eq.s32.totalorder %s1097_s27, 5 }
  0x1f   : > { %s3028_s8 = scalar_select %p1579_p9, 1, 0 }
  0x20   : > { %s1586_s9 = scalar_select %p71_p10, %s1457_s21, %s73_s7  }
  0x21   : > { %p1588_p13 = por %p84_p12, %p83_p11  ;;  %p89_p0 = scmp.ne.s32.totalorder %s1453_s20, %s1449_s19 }
  0x22   : > { %s40_s11 = ssub.s32 %s38_s30, %s39_s5  ;;  %p90_p1 = scmp.eq.s32.totalorder %s1098_s28, 5 }
  0x23   : > { %s3029_s10 = scalar_select %p1588_p13, 1, 0 }
  0x24   : > { %p43_p2 = scmp.eq.s32.totalorder %s40_s11, 0  ;;  %p1594_p3 = por %p90_p1, %p89_p0 }
  0x25   : > { %p1254_p4 = scmp.lt.s32.totalorder %s1481_s26, 6  ;;  %s110_s14 = sand.u32 1, %s1469_s24  }
  0x26   : > { %s3030_s12 = scalar_select %p1594_p3, 1, 0 }
  0x27   : > { %s1600_s13 = scalar_select %p43_p2, %s1469_s24, %s45_s3  }
  0x28   : > { %p1605_p5 = pnand %p1254_p4, %p1570_p6  ;;  %s1101_s16 = sshll.u32 %s110_s14, 8 }
  0x29   : > { %3031 = sst [smem:[#allocation16_spill]] %s1600_s13  ;;  %p1104_p7 = scmp.ge.s32.totalorder %s1481_s26, 1 }
  0x2a   : > { %s1238_s17 = scalar_select %p1570_p6, [#allocation3], [#allocation8] }
  0x2b   : > { %s1239_s18 = scalar_select %p1570_p6, %s1477_s25, 0 }
  0x2c   : > { %s3251_s17 = smov (!%p1254_p4, %s1238_s17), [#allocation9]  ;;  %s114_s27 = scalar_lea.vmem [#allocation4], %s1101_s16 }
  0x2d   : > { %s3253_s18 = smov (!%p1254_p4, %s1239_s18), 0  ;;  %s123_s28 = sshll.u32 %s114_s27, 4  ;;  %s1620_s28 = int_to_ptr.vmem [resolvable:$true] %s123_s28 }
  0x2e   : > { %s115_s22 = sld [smem:[%s3251_s17 + %s3253_s18]]  ;;  %p131_p8 = scmp.lt.s32.totalorder %s1481_s26, 7 }
  0x2f   : > { %s3034_s1 = sld [smem:[#allocation17_spill]]  ;;  %s1627_s7 = scalar_lea.sflag [#allocation5], %s110_s14 }
  0x30   : > { %p1616_p10 = pnand %p1104_p7, %p131_p8  ;;  %p1345_p11 = pneg %p1605_p5 }
  0x34   : > { %s1179_s3 = sshll.u32 %s115_s22, 12 }
  0x35   : > { %s1625_s4 = scalar_lea.hbm %s3034_s1, %s1179_s3  ;;  %s1348_s18 = scalar_lea.hbm %s3034_s1, 8192 }
  0x36   : > { %s1343_s11 = scalar_lea.hbm %s1625_s4, 4096  ;;  %p1349_p1 = scmp.lt.u32.totalorder %s1625_s4, %s3034_s1 }
  0x37   : > { %p1344_p6 = scmp.ne.s32.totalorder %s1625_s4, %s1343_s11  ;;  %p1350_p2 = scmp.lt.u32.totalorder %s1348_s18, %s1343_s11 }
  0x38   : > { %p1352_p7 = scmp.lt.u32.totalorder %s1343_s11, %s1625_s4 }
  0x39   : > { %p1346_p12 = pnand %p1345_p11, %p1344_p6  ;;  %p1351_p4 = por %p1350_p2, %p1349_p1 }
  0x3b   : > { %p1347_p0 = pneg %p1346_p12  ;;  %p1353_p8 = por %p1352_p7, %p1351_p4 }
  0x3d   : > { %p1354_p3 = pnand %p1353_p8, %p1347_p0 }
  0x3f   : > { %1357 = shalt.err (!%p1354_p3)
}
  0x40   : > { %s1358_s14 = scalar_lea.vmem %s1620_s28, 4096  ;;  %s1484_s3 = smov [#allocation4]  }
  0x41   : > { %p1359_p6 = scmp.ne.s32.totalorder %s1620_s28, %s1358_s14  ;;  %s1363_s5 = sshll.u32 %s1484_s3, 4  ;;  %s1364_s5 = int_to_ptr.vmem [resolvable:$false] %s1363_s5 }
  0x42   : > { %s1365_s6 = scalar_lea.vmem %s1364_s5, 8192  ;;  %p1366_p9 = scmp.lt.s32.totalorder %s1620_s28, %s1364_s5 }
  0x43   : > { %p1361_p12 = pnand %p1359_p6, %p1345_p11  ;;  %p1367_p1 = scmp.lt.s32.totalorder %s1365_s6, %s1358_s14 }
  0x45   : > { %p1362_p13 = pneg %p1361_p12  ;;  %p1368_p2 = por %p1367_p1, %p1366_p9 }
  0x47   : > { %p1369_p4 = pnand %p1368_p2, %p1362_p13 }
  0x49   : > { %1372 = shalt.err (!%p1369_p4)
}
  0x4a   : > { %s1485_s11 = smov 128   ;;  %s1486_s16 = smov 8  }
  0x4b   : > { %1249 = dma.hbm_to_vmem [thread:$0]  (!%p1605_p5), %s1625_s4, 4096, %s1620_s28, %s1627_s7, %s1485_s11, %s1485_s11, %s1486_s16  }
  0x4c   : > { %135 = sbr.rel (%p1616_p10) target bundleno = 256 (0x100), region = 24  ;;  %s137_s17 = sand.u32 (!%p1616_p10), 1, %s1465_s23  }
  0x4d   : > { %s1105_s18 = sshll.u32 (!%p1616_p10), %s137_s17, 8  ;;  %s138_s22 = scalar_lea.sflag (!%p1616_p10), [#allocation5], %s137_s17 }
  0x4e   : > { %s1658_s27 = scalar_lea.vmem (!%p1616_p10), [#allocation4], %s1105_s18  ;;  %p3035_p9 = scmp.ne.s32.totalorder (!%p1616_p10), %s3028_s8, 0 }
  0x53   : > { %1440 = dma.done.wait (%p3035_p9), %s138_s22, 4096  }
  0x54   : > { %1442 = vsyncadd (%p3035_p9), %s138_s22, 4294963200  ;;  %s161_s14 = sshra.s32 %s1473_s0, 7  ;;  %s166_s4 = sand.u32 127, %s1473_s0  ;;  %v197_v0 = vlaneseq  ;;  %v1734_v6 = vld [vmem:[%s1658_s27] sm:$0xff]  ;;  %v1737_v7 = vld [vmem:[%s1658_s27 + $0x8] sm:$0xff] }
  0x55   : > { %s1180_s15 = sshll.u32 %s161_s14, 7  ;;  %s3015_s29 = sand.u32 1, %s1453_s20   ;;  %v1756_v9 = vld [vmem:[%s1658_s27 + $0x10] sm:$0xff]  ;;  %v1759_v10 = vld [vmem:[%s1658_s27 + $0x18] sm:$0xff]  ;;  %v1762_v11 = vld [vmem:[%s1658_s27 + $0x20] sm:$0xff] }
  0x56   : > { %s1181_s28 = sadd.s32 128, %s1180_s15  ;;  %s1183_s3 = sadd.s32 256, %s1180_s15  ;;  %v1694_v1 = vshrl.u32 %v197_v0, 7  ;;  %v1765_v12 = vld [vmem:[%s1658_s27 + $0x28] sm:$0xff]  ;;  %v1784_v14 = vld [vmem:[%s1658_s27 + $0x30] sm:$0xff]  ;;  %v1787_v15 = vld [vmem:[%s1658_s27 + $0x38] sm:$0xff] }
  0x57   : > { %s167_s30 = sadd.s32 %s1181_s28, %s166_s4  ;;  %s171_s5 = sadd.s32 %s1183_s3, %s166_s4  ;;  %v1790_v16 = vld [vmem:[%s1658_s27 + $0x40] sm:$0xff]  ;;  %v1793_v17 = vld [vmem:[%s1658_s27 + $0x48] sm:$0xff]  ;;  %v1813_v19 = vld [vmem:[%s1658_s27 + $0x50] sm:$0xff] }
  0x58   : > { %s1666_s7 = sld [smem:[#allocation3 + %s167_s30]]  ;;  %s1185_s6 = sadd.s32 384, %s1180_s15  ;;  %v1712_v4 = vadd.s32 8, %v1694_v1  ;;  %v1816_v20 = vld [vmem:[%s1658_s27 + $0x58] sm:$0xff]  ;;  %v1819_v21 = vld [vmem:[%s1658_s27 + $0x60] sm:$0xff]  ;;  %v1822_v22 = vld [vmem:[%s1658_s27 + $0x68] sm:$0xff] }
  0x59   : > { %s1668_s11 = sld [smem:[#allocation3 + %s171_s5]]  ;;  %s175_s16 = sadd.s32 %s1185_s6, %s166_s4  ;;  %v1841_v24 = vld [vmem:[%s1658_s27 + $0x70] sm:$0xff]  ;;  %v1844_v25 = vld [vmem:[%s1658_s27 + $0x78] sm:$0xff]  ;;  %v1847_v26 = vld [vmem:[%s1658_s27 + $0x80] sm:$0xff] }
  0x5a   : > { %s176_s8 = sld [smem:[#allocation3 + %s175_s16]]  ;;  %s1187_s17 = sadd.s32 512, %s1180_s15  ;;  %v1864_v28 = vld [vmem:[%s1658_s27 + $0x88] sm:$0xff]  ;;  %v1867_v29 = vld [vmem:[%s1658_s27 + $0x90] sm:$0xff]  ;;  %v1895_v33 = vld [vmem:[%s1658_s27 + $0x98] sm:$0xff] }
  0x5b   : > { %s179_s18 = sadd.s32 %s1187_s17, %s166_s4  ;;  %s1677_s15 = smul.u32 12, %s3015_s29  ;;  %v1945_v44 = vld [vmem:[%s1658_s27 + $0xa0] sm:$0xff]  ;;  %v1971_v50 = vld [vmem:[%s1658_s27 + $0xa8] sm:$0xff]  ;;  %v1974_v51 = vld [vmem:[%s1658_s27 + $0xb0] sm:$0xff] }
  0x5c   : > { %s180_s22 = sld [smem:[#allocation3 + %s179_s18]]  ;;  %v1999_v57 = vld [vmem:[%s1658_s27 + $0xb8] sm:$0xff]  ;;  %v2002_v58 = vld [vmem:[%s1658_s27 + $0xc0] sm:$0xff]  ;;  %v2023_v0 = vld [vmem:[%s1658_s27 + $0xc8] sm:$0xff] }
  0x5d   : > { %v2026_v5 = vld [vmem:[%s1658_s27 + $0xd0] sm:$0xff]  ;;  %v2069_v38 = vld [vmem:[%s1658_s27 + $0xe8] sm:$0xff] }
  0x60   : > { %s181_s14 = ssub.s32 %s176_s8, %s1666_s7 }
  0x61   : > { %s182_s1 = sadd.s32 1, %s181_s14 }
  0x62   : > { %p183_p13 = scmp.gt.s32.totalorder %s182_s1, 1  ;;  %s185_s28 = ssub.s32 %s180_s22, %s1668_s11 }
  0x63   : > { %s186_s30 = sadd.s32 1, %s185_s28 }
  0x64   : > { %s3255_s1 = smov (!%p183_p13, %s182_s1), 1  ;;  %p187_p3 = scmp.gt.s32.totalorder %s186_s30, 1 }
  0x65   : > { %s193_s25 = scvt.s32.f32 %s3255_s1 }
  0x66   : > { %s3257_s30 = smov (!%p187_p3, %s186_s30), 1 }
  0x67   : > { %s1673_s3 = smul.f32 0.33333334, %s193_s25  ;;  %s189_s4 = scvt.s32.f32 %s3257_s30 }
  0x69   : > { %s391_s5 = smul.f32 0.0, %s1673_s3  ;;  %s399_s6 = sceil.f32 %s1673_s3 }
  0x6a   : > { %s1681_s16 = smul.f32 0.33333334, %s189_s4  ;;  %s1220_s1 = scvt.f32.s32 %s399_s6 }
  0x6b   : > { %s392_s8 = sfloor.f32 %s391_s5  ;;  %s435_s25 = sfloor.f32 %s1673_s3 }
  0x6c   : > { %s200_s17 = smul.f32 0.0, %s1681_s16  ;;  %s208_s18 = sceil.f32 %s1681_s16 }
  0x6d   : > { %s1216_s22 = scvt.f32.s32 %s208_s18  ;;  %s1218_s14 = scvt.f32.s32 %s392_s8 }
  0x6e   : > { %s201_s28 = sfloor.f32 %s200_s17  ;;  %s1687_s13 = sadd.s32 %s1220_s1, %s1666_s7 }
  0x6f   : > { %s1214_s29 = scvt.f32.s32 %s201_s28  ;;  %s210_s30 = sadd.s32 %s1216_s22, %s1668_s11 }
  0x70   : > { %p211_p5 = scmp.gt.s32.totalorder %s210_s30, 0  ;;  %p1115_p10 = scmp.lt.s32.totalorder %s210_s30, 16 }
  0x71   : > { %s203_s4 = sadd.s32 %s1214_s29, %s1668_s11  ;;  %s1692_s24 = sadd.s32 %s1218_s14, %s1666_s7 }
  0x72   : > { %p204_p11 = scmp.gt.s32.totalorder %s203_s4, 0  ;;  %p1110_p0 = scmp.lt.s32.totalorder %s203_s4, 16 }
  0x73   : > { %s3259_s30 = smov (!%p211_p5, %s210_s30), 0  ;;  %p395_p7 = scmp.gt.s32.totalorder %s1692_s24, 0 }
  0x74   : > { %s3261_s4 = smov (!%p204_p11, %s203_s4), 0  ;;  %s3263_s30 = smov (!%p1115_p10, %s3259_s30), 16 }
  0x75   : > { %s3265_s4 = smov (!%p1110_p0, %s3261_s4), 16  ;;  %v1701_v2 = vstv %s3263_s30  ;;  %p1120_p8 = scmp.lt.s32.totalorder %s1692_s24, 16 }
  0x76   : > { %v1706_v3 = vstv %s3265_s4  ;;  %vm233_vm0 = vcmp.gt.s32.totalorder %v1701_v2, 0  ;;  %p402_p6 = scmp.gt.s32.totalorder %s1687_s13, 0  ;;  %p1125_p12 = scmp.lt.s32.totalorder %s1687_s13, 16  ;;  %vm234_vm3 = vcmp.gt.s32.totalorder %v1701_v2, 1  ;;  %vm235_vm7 = vcmp.gt.s32.totalorder %v1701_v2, 2 }
  0x77   : > { %vm216_vm1 = vcmp.le.s32.totalorder %v1706_v3, 0  ;;  %vm217_vm2 = vcmp.le.s32.totalorder %v1706_v3, 1  ;;  %s396_s29 = scalar_select %p395_p7, %s1692_s24, 0  ;;  %vm218_vm4 = vcmp.le.s32.totalorder %v1706_v3, 2  ;;  %vm219_vm5 = vcmp.le.s32.totalorder %v1706_v3, 3 }
  0x78   : > { %vm220_vm6 = vcmp.le.s32.totalorder %v1706_v3, 4  ;;  %s403_s5 = scalar_select %p402_p6, %s1687_s13, 0  ;;  %vm221_vm8 = vcmp.le.s32.totalorder %v1706_v3, 5  ;;  %vm222_vm9 = vcmp.le.s32.totalorder %v1706_v3, 6  ;;  %vm1729_vm12 = vmand %vm216_vm1, %vm233_vm0  ;;  %vm236_vm15 = vcmp.gt.s32.totalorder %v1701_v2, 3 }
  0x79   : > { %s3267_s29 = smov (!%p1120_p8, %s396_s29), 16  ;;  %vm1751_vm1 = vmand %vm217_vm2, %vm234_vm3  ;;  %vm237_vm2 = vcmp.gt.s32.totalorder %v1701_v2, 4  ;;  %vm238_vm3 = vcmp.gt.s32.totalorder %v1701_v2, 5  ;;  %p406_p1 = scmp.le.s32.totalorder %s3263_s30, %s3265_s4  ;;  %vm245_vm11 = vcmp.gt.s32.totalorder %v1701_v2, 12  ;;  %vm246_vm13 = vcmp.gt.s32.totalorder %v1701_v2, 13 }
  0x7a   : > { %s3269_s5 = smov (!%p1125_p12, %s403_s5), 16  ;;  %vm1779_vm14 = vmand %vm218_vm4, %vm235_vm7  ;;  %s1222_s24 = scvt.f32.s32 %s435_s25  ;;  %vm239_vm7 = vcmp.gt.s32.totalorder %v1701_v2, 6  ;;  %vm247_vm4 = vcmp.gt.s32.totalorder %v1701_v2, 14  ;;  %v329_v30 = vsel %vm1729_vm12, %v1734_v6, -inf  ;;  %v330_v31 = vsel %vm1729_vm12, %v1737_v7, -inf }
  0x7b   : > { %vm1808_vm10 = vmand %vm219_vm5, %vm236_vm15  ;;  %p407_p2 = scmp.le.s32.totalorder %s3269_s5, %s3267_s29  ;;  %s442_s13 = smul.f32 2.0, %s1673_s3  ;;  %vm243_vm5 = vcmp.gt.s32.totalorder %v1701_v2, 10  ;;  %vm244_vm15 = vcmp.gt.s32.totalorder %v1701_v2, 11  ;;  %v331_v34 = vsel %vm1751_vm1, %v1756_v9, -inf  ;;  %v332_v35 = vsel %vm1751_vm1, %v1759_v10, -inf }
  0x7c   : > { %vm1836_vm0 = vmand %vm220_vm6, %vm237_vm2  ;;  %s1850_s6 = sadd.s32 %s1222_s24, %s1666_s7  ;;  %s485_s1 = smul.f32 3.0, %s1673_s3  ;;  %vm248_vm6 = vcmp.gt.s32.totalorder %v1701_v2, 15  ;;  %v333_v36 = vsel %vm1779_vm14, %v1762_v11, -inf  ;;  %v334_v37 = vsel %vm1779_vm14, %v1765_v12, -inf  ;;  %vm3052_vm12 = vcmp.le.s32.totalorder %v1706_v3, 7 }
  0x7d   : > { %vm1859_vm2 = vmand %vm221_vm8, %vm238_vm3  ;;  %p1881_p4 = por %p407_p2, %p406_p1  ;;  %p438_p9 = scmp.gt.s32.totalorder %s1850_s6, 0  ;;  %v335_v39 = vsel %vm1808_vm10, %v1784_v14, -inf  ;;  %v336_v40 = vsel %vm1808_vm10, %v1787_v15, -inf  ;;  %v337_v41 = vsel %vm1836_vm0, %v1790_v16, -inf  ;;  %v338_v42 = vsel %vm1836_vm0, %v1793_v17, -inf }
  0x7e   : > { %vm1890_vm8 = vmand %vm222_vm9, %vm239_vm7  ;;  %p1130_p13 = scmp.lt.s32.totalorder %s1850_s6, 16  ;;  %s1912_s25 = sceil.f32 %s442_s13  ;;  %vm3051_vm9 = vcmp.gt.s32.totalorder %v1701_v2, 7  ;;  %vm3055_vm14 = vcmp.gt.s32.totalorder %v1701_v2, 8  ;;  %vm3056_vm3 = vcmp.le.s32.totalorder %v1706_v3, 8  ;;  %v339_v45 = vsel %vm1859_vm2, %v1813_v19, -inf }
  0x7f   : > { %vm1918_vm1 = vmand %vm3052_vm12, %vm3051_vm9  ;;  %s430_s17 = scalar_select %p1881_p4, 1, 0  ;;  %v340_v46 = vsel %vm1859_vm2, %v1816_v20, -inf  ;;  %v341_v47 = vsel %vm1890_vm8, %v1819_v21, -inf  ;;  %v342_v48 = vsel %vm1890_vm8, %v1822_v22, -inf  ;;  %vm3059_vm10 = vcmp.gt.s32.totalorder %v1701_v2, 9 }
  0x80   : > { %vm1940_vm7 = vmand %vm3056_vm3, %vm3055_vm14  ;;  %s439_s18 = scalar_select %p438_p9, %s1850_s6, 0  ;;  %vm3060_vm0 = vcmp.le.s32.totalorder %v1706_v3, 9  ;;  %v343_v52 = vsel %vm1918_vm1, %v1841_v24, -inf  ;;  %v344_v53 = vsel %vm1918_vm1, %v1844_v25, -inf  ;;  %v361_v55 = vmax.f32 %v329_v30, %v333_v36  ;;  %v2047_v30 = vld [vmem:[%s1658_s27 + $0xd8] sm:$0xff] }
  0x81   : > { %vm1966_vm9 = vmand %vm3060_vm0, %vm3059_vm10  ;;  %v345_v54 = vsel %vm1940_vm7, %v1847_v26, -inf  ;;  %s1224_s22 = scvt.f32.s32 %s1912_s25  ;;  %s1988_s14 = sfloor.f32 %s442_s13  ;;  %vm3063_vm2 = vcmp.le.s32.totalorder %v1706_v3, 10  ;;  %v346_v59 = vsel %vm1940_vm7, %v1864_v28, -inf  ;;  %v362_v61 = vmax.f32 %v331_v34, %v335_v39  ;;  %v2072_v39 = vld [vmem:[%s1658_s27 + $0xf0] sm:$0xff] }
  0x82   : > { %vm1994_vm8 = vmand %vm3063_vm2, %vm243_vm5  ;;  %v347_v60 = vsel %vm1966_vm9, %v1867_v29, -inf  ;;  %v376_v62 = vmax.f32 %v330_v31, %v334_v37  ;;  %s3271_s18 = smov (!%p1130_p13, %s439_s18), 16  ;;  %vm3066_vm5 = vcmp.le.s32.totalorder %v1706_v3, 11  ;;  %v348_v8 = vsel %vm1966_vm9, %v1895_v33, -inf  ;;  %s1226_s24 = scvt.f32.s32 %s1988_s14  ;;  %v2050_v31 = vld [vmem:[%s1658_s27 + $0xe0] sm:$0xff] }
  0x83   : > { %vm2018_vm12 = vmand %vm3066_vm5, %vm244_vm15  ;;  %v349_v13 = vsel %vm1994_vm8, %v1945_v44, -inf  ;;  %v363_v18 = vmax.f32 %v361_v55, %v337_v41  ;;  %v377_v23 = vmax.f32 %v332_v35, %v336_v40  ;;  %s2035_s28 = sadd.s32 %s1224_s22, %s1666_s7  ;;  %vm3069_vm15 = vcmp.le.s32.totalorder %v1706_v3, 12  ;;  %s2085_s6 = sceil.f32 %s485_s1 }
  0x84   : > { %vm2042_vm1 = vmand %vm3069_vm15, %vm245_vm11  ;;  %v350_v32 = vsel %vm1994_vm8, %v1971_v50, -inf  ;;  %v351_v34 = vsel %vm2018_vm12, %v1974_v51, -inf  ;;  %v364_v35 = vmax.f32 %v362_v61, %v339_v45  ;;  %v378_v36 = vmax.f32 %v376_v62, %v338_v42  ;;  %p446_p3 = scmp.gt.s32.totalorder %s2035_s28, 0  ;;  %p1135_p5 = scmp.lt.s32.totalorder %s2035_s28, 16  ;;  %v2113_v61 = vld [vmem:[%s1658_s27 + $0xf8] sm:$0xff] }
  0x85   : > { %vm3072_vm11 = vcmp.le.s32.totalorder %v1706_v3, 13  ;;  %v352_v40 = vsel %vm2018_vm12, %v1999_v57, -inf  ;;  %v353_v41 = vsel %vm2042_vm1, %v2002_v58, -inf  ;;  %v365_v42 = vmax.f32 %v363_v18, %v341_v47  ;;  %s2081_s13 = sadd.s32 %s1226_s24, %s1666_s7  ;;  %s1228_s1 = scvt.f32.s32 %s2085_s6 }
  0x86   : > { %vm2064_vm14 = vmand %vm3072_vm11, %vm246_vm13  ;;  %v379_v43 = vmax.f32 %v377_v23, %v340_v46  ;;  %vm3075_vm13 = vcmp.le.s32.totalorder %v1706_v3, 14  ;;  %v354_v47 = vsel %vm2042_vm1, %v2023_v0, -inf  ;;  %v366_v49 = vmax.f32 %v364_v35, %v343_v52  ;;  %s447_s3 = scalar_select %p446_p3, %s2035_s28, 0 }
  0x87   : > { %vm2091_vm3 = vmand %vm3075_vm13, %vm247_vm4  ;;  %v355_v46 = vsel %vm2064_vm14, %v2026_v5, -inf  ;;  %v380_v55 = vmax.f32 %v378_v36, %v342_v48  ;;  %vm3078_vm4 = vcmp.le.s32.totalorder %v1706_v3, 15  ;;  %v356_v52 = vsel %vm2064_vm14, %v2047_v30, -inf  ;;  %p481_p10 = scmp.gt.s32.totalorder %s2081_s13, 0  ;;  %p1140_p11 = scmp.lt.s32.totalorder %s2081_s13, 16 }
  0x88   : > { %vm2108_vm7 = vmand %vm3078_vm4, %vm248_vm6  ;;  %v357_v48 = vsel %vm2091_vm3, %v2050_v31, -inf  ;;  %v367_v2 = vmax.f32 %v365_v42, %v345_v54  ;;  %v381_v62 = vmax.f32 %v379_v43, %v344_v53  ;;  %v358_v3 = vsel %vm2091_vm3, %v2069_v38, -inf  ;;  %s3273_s3 = smov (!%p1135_p5, %s447_s3), 16  ;;  %s488_s22 = sadd.s32 %s1228_s1, %s1666_s7 }
  0x89   : > { %v359_v63 = vsel %vm2108_vm7, %v2072_v39, -inf  ;;  %v368_v18 = vmax.f32 %v366_v49, %v347_v60  ;;  %v382_v23 = vmax.f32 %v380_v55, %v346_v59  ;;  %v409_v27 = vstv %s3267_s29  ;;  %s482_s27 = scalar_select %p481_p10, %s2081_s13, 0 }
  0x8a   : > { %v369_v53 = vmax.f32 %v367_v2, %v349_v13  ;;  %v383_v54 = vmax.f32 %v381_v62, %v348_v8  ;;  %v412_v35 = vstv %s3269_s5  ;;  %v360_v60 = vsel %vm2108_vm7, %v2113_v61, -inf  ;;  %p450_p0 = scmp.le.s32.totalorder %s3273_s3, %s3271_s18  ;;  %p489_p8 = scmp.gt.s32.totalorder %s488_s22, 0 }
  0x8b   : > { %v370_v59 = vmax.f32 %v368_v18, %v351_v34  ;;  %v384_v36 = vmax.f32 %v382_v23, %v350_v32  ;;  %vm2140_vm6 = vcmp.ge.s32.totalorder %v1694_v1, %v409_v27  ;;  %vm2148_vm10 = vcmp.ge.s32.totalorder %v1712_v4, %v409_v27  ;;  %s3275_s27 = smov (!%p1140_p11, %s482_s27), 16  ;;  %p1145_p6 = scmp.lt.s32.totalorder %s488_s22, 16 }
  0x8c   : > { %v371_v8 = vmax.f32 %v369_v53, %v353_v41  ;;  %v385_v13 = vmax.f32 %v383_v54, %v352_v40  ;;  %vm2153_vm0 = vcmp.lt.s32.totalorder %v1694_v1, %v412_v35  ;;  %vm2162_vm9 = vcmp.lt.s32.totalorder %v1712_v4, %v412_v35  ;;  %p2172_p7 = por %p450_p0, %p406_p1  ;;  %s521_s28 = sfloor.f32 %s1681_s16 }
  0x8d   : > { %v372_v32 = vmax.f32 %v370_v59, %v355_v46  ;;  %v386_v34 = vmax.f32 %v384_v36, %v354_v47  ;;  %v452_v40 = vstv %s3271_s18  ;;  %vm2187_vm8 = vmand %vm2140_vm6, %vm2153_vm0  ;;  %v3094_v2 = vmov 0  ;;  %s490_s14 = scalar_select %p489_p8, %s488_s22, 0 }
  0x8e   : > { %v373_v45 = vmax.f32 %v371_v8, %v357_v48  ;;  %v387_v49 = vmax.f32 %v385_v13, %v356_v52  ;;  %vm2179_vm2 = vcmp.ge.s32.totalorder %v1694_v1, %v452_v40  ;;  %vm454_vm5 = vcmp.ge.s32.totalorder %v1712_v4, %v452_v40  ;;  %vm2199_vm12 = vmand %vm2148_vm10, %vm2162_vm9  ;;  %s528_s24 = smul.f32 2.0, %s1681_s16  ;;  %s1230_s13 = scvt.f32.s32 %s521_s28 }
  0x8f   : > { %v374_v46 = vmax.f32 %v372_v32, %v359_v63  ;;  %v388_v55 = vmax.f32 %v386_v34, %v358_v3  ;;  %v455_v52 = vstv %s3273_s3  ;;  %v3095_v2 = vsel %vm2199_vm12, 4294967295, %v3094_v2  ;;  %s3277_s14 = smov (!%p1145_p6, %s490_s14), 16  ;;  %s2301_s25 = scalar_lea.vmem [#allocation7], %s1677_s15 }
  0x90   : > { %v389_v48 = vmax.f32 %v387_v49, %v360_v60  ;;  %vm456_vm15 = vcmp.lt.s32.totalorder %v1694_v1, %v455_v52  ;;  %vm457_vm1 = vcmp.lt.s32.totalorder %v1712_v4, %v455_v52  ;;  %v495_v62 = vstv %s3275_s27  ;;  %s529_s6 = sceil.f32 %s528_s24  ;;  %p493_p12 = scmp.le.s32.totalorder %s3277_s14, %s3275_s27 }
  0x91   : > { %v375_v3 = vmax.f32 %v373_v45, %v374_v46  ;;  %vm2208_vm11 = vmand %vm2179_vm2, %vm456_vm15  ;;  %v3096_v63 = vmov 0  ;;  %v3098_v23 = vmov 0  ;;  %vm2226_vm13 = vcmp.ge.s32.totalorder %v1694_v1, %v495_v62  ;;  %s1232_s1 = scvt.f32.s32 %s529_s6  ;;  %s523_s22 = sadd.s32 %s1230_s13, %s1668_s11 }
  0x92   : > { %v3097_v63 = vsel %vm2208_vm11, 4294967295, %v3096_v63  ;;  %v390_v18 = vmax.f32 %v388_v55, %v389_v48  ;;  %vm2214_vm14 = vmand %vm454_vm5, %vm457_vm1  ;;  %vm497_vm3 = vcmp.ge.s32.totalorder %v1712_v4, %v495_v62  ;;  %v498_v59 = vstv %s3277_s14  ;;  %s2241_s28 = sfloor.f32 %s528_s24  ;;  %p2249_p9 = por %p493_p12, %p406_p1 }
  0x93   : > { %v3099_v23 = vsel %vm2214_vm14, 4294967295, %v3098_v23  ;;  %v421_v53 = vsel %vm2187_vm8, %v375_v3, -inf  ;;  %v464_v54 = vsel %vm2208_vm11, %v375_v3, -inf  ;;  %vm499_vm4 = vcmp.lt.s32.totalorder %v1694_v1, %v498_v59  ;;  %p524_p13 = scmp.gt.s32.totalorder %s523_s22, 0  ;;  %p1150_p1 = scmp.lt.s32.totalorder %s523_s22, 16 }
  0x94   : > { %v422_v35 = vsel %vm2199_vm12, %v390_v18, -inf  ;;  %v465_v60 = vsel %vm2214_vm14, %v390_v18, -inf  ;;  %vm500_vm7 = vcmp.lt.s32.totalorder %v1712_v4, %v498_v59  ;;  %vm2255_vm6 = vmand %vm2226_vm13, %vm499_vm4  ;;  %v3103_v8 = vmov 0  ;;  %s531_s30 = sadd.s32 %s1232_s1, %s1668_s11  ;;  %s1234_s13 = scvt.f32.s32 %s2241_s28 }
  0x95   : > { %v423_v36 = vmax.f32 %v421_v53, %v422_v35  ;;  %v466_v37 = vmax.f32 %v464_v54, %v465_v60  ;;  %v3104_v8 = vsel %vm2255_vm6, 4294967295, %v3103_v8  ;;  %vm2259_vm10 = vmand %vm497_vm3, %vm500_vm7  ;;  %v3105_v4 = vmov 0  ;;  %s516_s4 = scalar_select %p2249_p9, 1, 0 }
  0x96   : > { %v3106_v4 = vsel %vm2259_vm10, 4294967295, %v3105_v4  ;;  %v507_v42 = vsel %vm2255_vm6, %v375_v3, -inf  ;;  %v508_v43 = vsel %vm2259_vm10, %v390_v18, -inf  ;;  %s3279_s22 = smov (!%p524_p13, %s523_s22), 0  ;;  %p532_p3 = scmp.gt.s32.totalorder %s531_s30, 0  ;;  %v431_v47 = vstv %s430_s17 }
  0x97   : > { %v424_v1 = vrot.slane %v423_v36, 4  ;;  %v467_v13 = vrot.slane %v466_v37, 4  ;;  %v509_v41 = vmax.f32 %v507_v42, %v508_v43  ;;  %p1155_p5 = scmp.lt.s32.totalorder %s531_s30, 16  ;;  %s3281_s22 = smov (!%p1150_p1, %s3279_s22), 16  ;;  %v517_v55 = vstv %s516_s4 }
  0x98   : > { %s3107_s7 = scalar_select %p2172_p7, 1, 0  ;;  %v2279_v3 = vstv %s3281_s22  ;;  %vm432_vm0 = vcmp.eq.s32.totalorder %v431_v47, 1  ;;  %vm518_vm2 = vcmp.eq.s32.totalorder %v517_v55, 1 }
  0x99   : > { %v425_v32 = vmax.f32 %v423_v36, %v424_v1  ;;  %v468_v34 = vmax.f32 %v466_v37, %v467_v13  ;;  %v510_v49 = vrot.slane %v509_v41, 4  ;;  %s533_s24 = scalar_select %p532_p3, %s531_s30, 0  ;;  %vm537_vm5 = vcmp.le.s32.totalorder %v2279_v3, 0 }
  0x9a   : > { %v474_v46 = vstv %s3107_s7  ;;  %s766_s6 = smul.f32 3.0, %s1681_s16  ;;  %s2290_s17 = sadd.s32 %s1234_s13, %s1668_s11  ;;  %vm3110_vm15 = vcmp.le.s32.totalorder %v2279_v3, 1 }
  0x9b   : > { %v426_v40 = vrot.slane %v425_v32, 2  ;;  %v469_v45 = vrot.slane %v468_v34, 2  ;;  %v511_v62 = vmax.f32 %v509_v41, %v510_v49  ;;  %s3283_s24 = smov (!%p1155_p5, %s533_s24), 16  ;;  %vm475_vm9 = vcmp.eq.s32.totalorder %v474_v46, 1  ;;  %p762_p4 = scmp.gt.s32.totalorder %s2290_s17, 0 }
  0x9c   : > { %s2286_s8 = sceil.f32 %s766_s6  ;;  %v2309_v1 = vstv %s3283_s24  ;;  %p1163_p10 = scmp.lt.s32.totalorder %s2290_s17, 16 }
  0x9d   : > { %v427_v52 = vmax.f32 %v425_v32, %v426_v40  ;;  %v470_v48 = vmax.f32 %v468_v34, %v469_v45  ;;  %v512_v54 = vrot.slane %v511_v62, 2  ;;  %s1236_s16 = scvt.f32.s32 %s2286_s8  ;;  %vm555_vm7 = vcmp.gt.s32.totalorder %v2309_v1, 1  ;;  %p712_p13 = scmp.le.s32.totalorder %s3283_s24, %s3281_s22 }
  0x9e   : > { %vm2336_vm10 = vmand %vm3110_vm15, %vm555_vm7  ;;  %vm3113_vm13 = vcmp.gt.s32.totalorder %v2309_v1, 2  ;;  %vm3114_vm15 = vcmp.le.s32.totalorder %v2279_v3, 2  ;;  %vm568_vm1 = vcmp.gt.s32.totalorder %v2309_v1, 14  ;;  %vm3117_vm4 = vcmp.gt.s32.totalorder %v2309_v1, 3  ;;  %s1237_s24 = smul.u32 192, %s1473_s0  ;;  %s1012_s6 = sshll.u32 %s2301_s25, 4  ;;  %s2946_s6 = int_to_ptr.vmem [resolvable:$true] %s1012_s6 }
  0x9f   : > { %v428_v18 = vrot.slane %v427_v52, 1  ;;  %v471_v53 = vrot.slane %v470_v48, 1  ;;  %v513_v60 = vmax.f32 %v511_v62, %v512_v54  ;;  %s2316_s15 = sadd.s32 %s1236_s16, %s1668_s11  ;;  %vm2353_vm7 = vmand %vm3114_vm15, %vm3113_vm13  ;;  %vm552_vm13 = vcmp.le.s32.totalorder %v2279_v3, 15  ;;  %p2609_p3 = por %p712_p13, %p407_p2 }
  0xa0   : > { %s763_s11 = scalar_select %p762_p4, %s2290_s17, 0  ;;  %vm569_vm15 = vcmp.gt.s32.totalorder %v2309_v1, 15  ;;  %v652_v47 = vsel %vm2336_vm10, %v1756_v9, -inf  ;;  %v653_v46 = vsel %vm2336_vm10, %v1759_v10, -inf  ;;  %v654_v55 = vsel %vm2353_vm7, %v1762_v11, -inf }
  0xa1   : > { %v429_v27 = vmax.f32 %v427_v52, %v428_v18  ;;  %v472_v35 = vmax.f32 %v470_v48, %v471_v53  ;;  %v514_v37 = vrot.slane %v513_v60, 1  ;;  %p770_p11 = scmp.gt.s32.totalorder %s2316_s15, 0  ;;  %p1168_p7 = scmp.lt.s32.totalorder %s2316_s15, 16  ;;  %v655_v52 = vsel %vm2353_vm7, %v1765_v12, -inf }
  0xa2   : > { %s3285_s11 = smov (!%p1163_p10, %s763_s11), 16  ;;  %vm3129_vm10 = vcmp.gt.s32.totalorder %v2309_v1, 6  ;;  %vm3130_vm7 = vcmp.le.s32.totalorder %v2279_v3, 6  ;;  %p2625_p5 = por %p712_p13, %p450_p0 }
  0xa3   : > { %v433_v59 = vsel %vm432_vm0, 0.0, %v429_v27  ;;  %v476_v36 = vsel %vm475_vm9, 0.0, %v472_v35  ;;  %v515_v13 = vmax.f32 %v513_v60, %v514_v37  ;;  %vm554_vm9 = vcmp.gt.s32.totalorder %v2309_v1, 0  ;;  %s771_s1 = scalar_select %p770_p11, %s2316_s15, 0 }
  0xa4   : > { %434 = vst [vmem:[%s2301_s25] sm:$0x1] %v433_v59  ;;  %477 = vst [vmem:[%s2301_s25 + $0x1] sm:$0x1] %v476_v36  ;;  %s723_s18 = scalar_select %p2609_p3, 1, 0 }
  0xa5   : > { %vm2324_vm0 = vmand %vm537_vm5, %vm554_vm9  ;;  %v519_v43 = vsel %vm518_vm2, 0.0, %v515_v13  ;;  %vm567_vm9 = vcmp.gt.s32.totalorder %v2309_v1, 13  ;;  %vm3118_vm2 = vcmp.le.s32.totalorder %v2279_v3, 3  ;;  %vm3121_vm5 = vcmp.gt.s32.totalorder %v2309_v1, 4  ;;  %s3287_s1 = smov (!%p1168_p7, %s771_s1), 16  ;;  %s2944_s16 = scalar_lea.hbm %s3010_s2, %s1237_s24 }
  0xa6   : > { %520 = vst [vmem:[%s2301_s25 + $0x2] sm:$0x1] %v519_v43  ;;  %vm2366_vm3 = vmand %vm3118_vm2, %vm3117_vm4  ;;  %v650_v40 = vsel %vm2324_vm0, %v1734_v6, -inf  ;;  %v651_v45 = vsel %vm2324_vm0, %v1737_v7, -inf  ;;  %vm3122_vm4 = vcmp.le.s32.totalorder %v2279_v3, 4  ;;  %vm3125_vm0 = vcmp.gt.s32.totalorder %v2309_v1, 5  ;;  %p950_p8 = scmp.le.s32.totalorder %s3287_s1, %s3285_s11 }
  0xa7   : > { %vm2382_vm2 = vmand %vm3122_vm4, %vm3121_vm5  ;;  %vm3126_vm5 = vcmp.le.s32.totalorder %v2279_v3, 5  ;;  %v656_v62 = vsel %vm2366_vm3, %v1784_v14, -inf  ;;  %v657_v18 = vsel %vm2366_vm3, %v1787_v15, -inf  ;;  %v682_v59 = vmax.f32 %v650_v40, %v654_v55  ;;  %s739_s3 = scalar_select %p2625_p5, 1, 0 }
  0xa8   : > { %vm2405_vm4 = vmand %vm3126_vm5, %vm3125_vm0  ;;  %v658_v53 = vsel %vm2382_vm2, %v1790_v16, -inf  ;;  %v659_v54 = vsel %vm2382_vm2, %v1793_v17, -inf  ;;  %v683_v36 = vmax.f32 %v652_v47, %v656_v62  ;;  %vm3133_vm3 = vcmp.gt.s32.totalorder %v2309_v1, 7  ;;  %p2507_p6 = por %p950_p8, %p407_p2  ;;  %p2517_p9 = por %p950_p8, %p450_p0 }
  0xa9   : > { %vm2429_vm0 = vmand %vm3130_vm7, %vm3129_vm10  ;;  %v660_v35 = vsel %vm2405_vm4, %v1813_v19, -inf  ;;  %v661_v60 = vsel %vm2405_vm4, %v1816_v20, -inf  ;;  %vm3134_vm2 = vcmp.le.s32.totalorder %v2279_v3, 7  ;;  %v697_v43 = vmax.f32 %v651_v45, %v655_v52  ;;  %p2543_p1 = por %p950_p8, %p493_p12  ;;  %p2635_p2 = por %p712_p13, %p493_p12 }
  0xaa   : > { %vm2447_vm5 = vmand %vm3134_vm2, %vm3133_vm3  ;;  %v662_v13 = vsel %vm2429_vm0, %v1819_v21, -inf  ;;  %v663_v42 = vsel %vm2429_vm0, %v1822_v22, -inf  ;;  %v698_v32 = vmax.f32 %v653_v46, %v657_v18  ;;  %vm3137_vm4 = vcmp.gt.s32.totalorder %v2309_v1, 8  ;;  %s961_s27 = scalar_select %p2507_p6, 1, 0 }
  0xab   : > { %vm3138_vm10 = vcmp.le.s32.totalorder %v2279_v3, 8  ;;  %v664_v41 = vsel %vm2447_vm5, %v1841_v24, -inf  ;;  %v665_v40 = vsel %vm2447_vm5, %v1844_v25, -inf  ;;  %v684_v45 = vmax.f32 %v682_v59, %v658_v53  ;;  %s754_s13 = scalar_select %p2635_p2, 1, 0 }
  0xac   : > { %vm2461_vm7 = vmand %vm3138_vm10, %vm3137_vm4  ;;  %v685_v49 = vmax.f32 %v683_v36, %v660_v35  ;;  %vm3141_vm0 = vcmp.gt.s32.totalorder %v2309_v1, 9  ;;  %vm3142_vm3 = vcmp.le.s32.totalorder %v2279_v3, 9  ;;  %v699_v52 = vmax.f32 %v697_v43, %v659_v54  ;;  %s977_s14 = scalar_select %p2517_p9, 1, 0 }
  0xad   : > { %vm2477_vm2 = vmand %vm3142_vm3, %vm3141_vm0  ;;  %v666_v46 = vsel %vm2461_vm7, %v1847_v26, -inf  ;;  %v667_v55 = vsel %vm2461_vm7, %v1864_v28, -inf  ;;  %v700_v48 = vmax.f32 %v698_v32, %v661_v60  ;;  %vm3145_vm5 = vcmp.gt.s32.totalorder %v2309_v1, 10  ;;  %s992_s22 = scalar_select %p2543_p1, 1, 0 }
  0xae   : > { %vm3146_vm4 = vcmp.le.s32.totalorder %v2279_v3, 10  ;;  %v668_v18 = vsel %vm2477_vm2, %v1867_v29, -inf  ;;  %v669_v53 = vsel %vm2477_vm2, %v1895_v33, -inf  ;;  %v686_v27 = vmax.f32 %v684_v45, %v662_v13  ;;  %s3236_s0 = sand.u32 1, %s1453_s20   ;;  %p3237_p12 = scmp.ne.s32.totalorder %s3029_s10, 0 }
  0xaf   : > { %vm2491_vm10 = vmand %vm3146_vm4, %vm3145_vm5  ;;  %v687_v35 = vmax.f32 %v685_v49, %v664_v41  ;;  %vm3151_vm7 = vcmp.gt.s32.totalorder %v2309_v1, 11  ;;  %vm3152_vm0 = vcmp.le.s32.totalorder %v2279_v3, 11  ;;  %v701_v36 = vmax.f32 %v699_v52, %v663_v42  ;;  %s2953_s15 = scalar_lea.sflag [#allocation6], %s3236_s0 }
  0xb0   : > { %vm2525_vm3 = vmand %vm3152_vm0, %vm3151_vm7  ;;  %v670_v60 = vsel %vm2491_vm10, %v1945_v44, -inf  ;;  %v671_v59 = vsel %vm2491_vm10, %v1971_v50, -inf  ;;  %v702_v37 = vmax.f32 %v700_v48, %v665_v40  ;;  %vm3156_vm2 = vcmp.gt.s32.totalorder %v2309_v1, 12 }
  0xb1   : > { %vm3157_vm5 = vcmp.le.s32.totalorder %v2279_v3, 12  ;;  %v672_v42 = vsel %vm2525_vm3, %v1974_v51, -inf  ;;  %v673_v43 = vsel %vm2525_vm3, %v1999_v57, -inf  ;;  %v688_v32 = vmax.f32 %v686_v27, %v666_v46 }
  0xb2   : > { %vm2551_vm4 = vmand %vm3157_vm5, %vm3156_vm2  ;;  %v689_v34 = vmax.f32 %v687_v35, %v668_v18  ;;  %vm3160_vm10 = vcmp.le.s32.totalorder %v2279_v3, 13  ;;  %v703_v49 = vmax.f32 %v701_v36, %v667_v55  ;;  %v704_v47 = vmax.f32 %v702_v37, %v669_v53 }
  0xb3   : > { %vm2565_vm7 = vmand %vm3160_vm10, %vm567_vm9  ;;  %v674_v40 = vsel %vm2551_vm4, %v2002_v58, -inf  ;;  %v675_v45 = vsel %vm2551_vm4, %v2023_v0, -inf  ;;  %vm3163_vm0 = vcmp.le.s32.totalorder %v2279_v3, 14  ;;  %v690_v48 = vmax.f32 %v688_v32, %v670_v60 }
  0xb4   : > { %vm2579_vm9 = vmand %vm3163_vm0, %vm568_vm1  ;;  %v676_v52 = vsel %vm2565_vm7, %v2026_v5, -inf  ;;  %v677_v55 = vsel %vm2565_vm7, %v2047_v30, -inf  ;;  %v691_v62 = vmax.f32 %v689_v34, %v672_v42  ;;  %v705_v35 = vmax.f32 %v703_v49, %v671_v59 }
  0xb5   : > { %vm2593_vm1 = vmand %vm552_vm13, %vm569_vm15  ;;  %v678_v53 = vsel %vm2579_vm9, %v2050_v31, -inf  ;;  %v679_v27 = vsel %vm2579_vm9, %v2069_v38, -inf  ;;  %v706_v54 = vmax.f32 %v704_v47, %v673_v43  ;;  %v692_v60 = vmax.f32 %v690_v48, %v674_v40 }
  0xb6   : > { %v680_v3 = vsel %vm2593_vm1, %v2072_v39, -inf  ;;  %v681_v1 = vsel %vm2593_vm1, %v2113_v61, -inf  ;;  %v693_v36 = vmax.f32 %v691_v62, %v676_v52  ;;  %v707_v59 = vmax.f32 %v705_v35, %v675_v45 }
  0xb7   : > { %v708_v37 = vmax.f32 %v706_v54, %v677_v55  ;;  %v694_v13 = vmax.f32 %v692_v60, %v678_v53  ;;  %v724_v46 = vstv %s723_s18  ;;  %vm3171_vm13 = vnez %v3106_v4 }
  0xb8   : > { %v695_v42 = vmax.f32 %v693_v36, %v680_v3  ;;  %v709_v43 = vmax.f32 %v707_v59, %v679_v27  ;;  %v740_v18 = vstv %s739_s3  ;;  %v755_v27 = vstv %s754_s13 }
  0xb9   : > { %v710_v32 = vmax.f32 %v708_v37, %v681_v1  ;;  %v2658_v1 = vstv %s3285_s11  ;;  %v2661_v37 = vstv %s3287_s1  ;;  %s1373_s11 = scalar_lea.vmem %s2946_s6, 192  ;;  %s1487_s1 = smov [#allocation7]  }
  0xba   : > { %v696_v34 = vmax.f32 %v694_v13, %v695_v42  ;;  %vm775_vm5 = vcmp.le.s32.totalorder %v2658_v1, 0  ;;  %vm792_vm3 = vcmp.gt.s32.totalorder %v2661_v37, 0  ;;  %vm793_vm2 = vcmp.gt.s32.totalorder %v2661_v37, 1  ;;  %p1374_p0 = scmp.ne.s32.totalorder %s2946_s6, %s1373_s11  ;;  %s1377_s28 = sshll.u32 %s1487_s1, 4  ;;  %s1378_s28 = int_to_ptr.vmem [resolvable:$false] %s1377_s28 }
  0xbb   : > { %v711_v41 = vmax.f32 %v709_v43, %v710_v32  ;;  %vm2679_vm9 = vmand %vm775_vm5, %vm792_vm3  ;;  %vm3174_vm7 = vcmp.le.s32.totalorder %v2658_v1, 1  ;;  %vm3177_vm10 = vcmp.gt.s32.totalorder %v2661_v37, 2  ;;  %vm3178_vm15 = vcmp.le.s32.totalorder %v2658_v1, 2  ;;  %s1379_s30 = scalar_lea.vmem %s1378_s28, 384  ;;  %p1380_p11 = scmp.lt.s32.totalorder %s2946_s6, %s1378_s28 }
  0xbc   : > { %v714_v40 = vsel %vm2187_vm8, %v696_v34, -inf  ;;  %v730_v45 = vsel %vm2208_vm11, %v696_v34, -inf  ;;  %v745_v49 = vsel %vm2255_vm6, %v696_v34, -inf  ;;  %vm2699_vm0 = vmand %vm3178_vm15, %vm3177_vm10  ;;  %vm3181_vm3 = vcmp.gt.s32.totalorder %v2661_v37, 3  ;;  %p1375_p4 = pnand %p1374_p0, %p3237_p12  ;;  %p1381_p7 = scmp.lt.s32.totalorder %s1379_s30, %s1373_s11 }
  0xbd   : > { %v715_v47 = vsel %vm2199_vm12, %v711_v41, -inf  ;;  %v731_v52 = vsel %vm2214_vm14, %v711_v41, -inf  ;;  %v746_v55 = vsel %vm3171_vm13, %v711_v41, -inf  ;;  %vm2689_vm13 = vmand %vm3174_vm7, %vm793_vm2  ;;  %vm3182_vm5 = vcmp.le.s32.totalorder %v2658_v1, 3 }
  0xbe   : > { %v716_v48 = vmax.f32 %v714_v40, %v715_v47  ;;  %v732_v62 = vmax.f32 %v730_v45, %v731_v52  ;;  %v747_v53 = vmax.f32 %v745_v49, %v746_v55  ;;  %vm2711_vm14 = vmand %vm3182_vm5, %vm3181_vm3  ;;  %vm3185_vm15 = vcmp.eq.s32.totalorder %v724_v46, 1  ;;  %p1376_p10 = pneg %p1375_p4  ;;  %p1382_p8 = por %p1381_p7, %p1380_p11 }
  0xbf   : > { %vm3186_vm10 = vcmp.eq.s32.totalorder %v740_v18, 1  ;;  %vm3187_vm12 = vcmp.eq.s32.totalorder %v755_v27, 1  ;;  %vm3188_vm1 = vcmp.gt.s32.totalorder %v2661_v37, 4  ;;  %vm3189_vm7 = vcmp.le.s32.totalorder %v2658_v1, 4 }
  0xc0   : > { %v717_v35 = vrot.slane %v716_v48, 4  ;;  %v733_v54 = vrot.slane %v732_v62, 4  ;;  %v748_v3 = vrot.slane %v747_v53, 4  ;;  %vm2724_vm6 = vmand %vm3189_vm7, %vm3188_vm1  ;;  %vm802_vm3 = vcmp.gt.s32.totalorder %v2661_v37, 10  ;;  %p1383_p6 = pnand %p1382_p8, %p1376_p10 }
  0xc1   : > { %vm803_vm5 = vcmp.gt.s32.totalorder %v2661_v37, 11  ;;  %vm3193_vm2 = vcmp.le.s32.totalorder %v2658_v1, 5  ;;  %vm3196_vm1 = vcmp.gt.s32.totalorder %v2661_v37, 6  ;;  %vm3197_vm7 = vcmp.le.s32.totalorder %v2658_v1, 6 }
  0xc2   : > { %v718_v60 = vmax.f32 %v716_v48, %v717_v35  ;;  %v734_v36 = vmax.f32 %v732_v62, %v733_v54  ;;  %v749_v59 = vmax.f32 %v747_v53, %v748_v3  ;;  %vm2747_vm11 = vmand %vm3197_vm7, %vm3196_vm1  ;;  %v888_v27 = vsel %vm2679_vm9, %v1734_v6, -inf }
  0xc3   : > { %v889_v6 = vsel %vm2679_vm9, %v1737_v7, -inf  ;;  %vm806_vm7 = vcmp.gt.s32.totalorder %v2661_v37, 14  ;;  %vm3205_vm9 = vcmp.le.s32.totalorder %v2658_v1, 8  ;;  %v901_v47 = vsel %vm2747_vm11, %v1822_v22, -inf }
  0xc4   : > { %v719_v13 = vrot.slane %v718_v60, 2  ;;  %v735_v42 = vrot.slane %v734_v36, 2  ;;  %v750_v43 = vrot.slane %v749_v59, 2 }
  0xc6   : > { %v720_v32 = vmax.f32 %v718_v60, %v719_v13  ;;  %v736_v34 = vmax.f32 %v734_v36, %v735_v42  ;;  %v751_v41 = vmax.f32 %v749_v59, %v750_v43  ;;  %v890_v59 = vsel %vm2689_vm13, %v1756_v9, -inf }
  0xc7   : > { %v892_v13 = vsel %vm2699_vm0, %v1762_v11, -inf  ;;  %v894_v42 = vsel %vm2711_vm14, %v1784_v14, -inf  ;;  %v891_v9 = vsel %vm2689_vm13, %v1759_v10, -inf  ;;  %v893_v11 = vsel %vm2699_vm0, %v1765_v12, -inf }
  0xc8   : > { %v721_v40 = vrot.slane %v720_v32, 1  ;;  %v737_v45 = vrot.slane %v736_v34, 1  ;;  %v752_v49 = vrot.slane %v751_v41, 1  ;;  %v895_v14 = vsel %vm2711_vm14, %v1787_v15, -inf }
  0xc9   : > { %v896_v10 = vsel %vm2724_vm6, %v1790_v16, -inf  ;;  %vm3208_vm14 = vcmp.gt.s32.totalorder %v2661_v37, 9  ;;  %vm3209_vm13 = vcmp.le.s32.totalorder %v2658_v1, 9 }
  0xca   : > { %v722_v55 = vmax.f32 %v720_v32, %v721_v40  ;;  %v738_v48 = vmax.f32 %v736_v34, %v737_v45  ;;  %v753_v62 = vmax.f32 %v751_v41, %v752_v49  ;;  %vm2803_vm0 = vmand %vm3209_vm13, %vm3208_vm14  ;;  %v897_v32 = vsel %vm2724_vm6, %v1793_v17, -inf }
  0xcb   : > { %v920_v34 = vmax.f32 %v888_v27, %v892_v13  ;;  %v921_v41 = vmax.f32 %v890_v59, %v894_v42  ;;  %v900_v40 = vsel %vm2747_vm11, %v1819_v21, -inf  ;;  %v935_v45 = vmax.f32 %v889_v6, %v893_v11 }
  0xcc   : > { %v726_v54 = vsel %vm3185_vm15, 0.0, %v722_v55  ;;  %v742_v3 = vsel %vm3186_vm10, 0.0, %v738_v48  ;;  %v757_v60 = vsel %vm3187_vm12, 0.0, %v753_v62  ;;  %vm804_vm12 = vcmp.gt.s32.totalorder %v2661_v37, 12 }
  0xcd   : > { %1160 = vst [vmem:[%s2301_s25 + $0x4] sm:$0x1] %v726_v54  ;;  %1161 = vst [vmem:[%s2301_s25 + $0x5] sm:$0x1] %v742_v3  ;;  %vm3192_vm10 = vcmp.gt.s32.totalorder %v2661_v37, 5  ;;  %vm3215_vm6 = vcmp.le.s32.totalorder %v2658_v1, 11  ;;  %v922_v52 = vmax.f32 %v920_v34, %v896_v10  ;;  %v937_v62 = vmax.f32 %v935_v45, %v897_v32 }
  0xce   : > { %1162 = vst [vmem:[%s2301_s25 + $0x6] sm:$0x1] %v757_v60  ;;  %vm2739_vm4 = vmand %vm3193_vm2, %vm3192_vm10  ;;  %vm3200_vm2 = vcmp.gt.s32.totalorder %v2661_v37, 7  ;;  %vm3201_vm10 = vcmp.le.s32.totalorder %v2658_v1, 7  ;;  %v906_v22 = vsel %vm2803_vm0, %v1867_v29, -inf  ;;  %vm3221_vm11 = vcmp.gt.s32.totalorder %v2661_v37, 13 }
  0xcf   : > { %vm2767_vm1 = vmand %vm3201_vm10, %vm3200_vm2  ;;  %vm807_vm2 = vcmp.gt.s32.totalorder %v2661_v37, 15  ;;  %vm3204_vm10 = vcmp.gt.s32.totalorder %v2661_v37, 8  ;;  %v898_v12 = vsel %vm2739_vm4, %v1813_v19, -inf  ;;  %v899_v16 = vsel %vm2739_vm4, %v1816_v20, -inf }
  0xd0   : > { %vm2789_vm15 = vmand %vm3205_vm9, %vm3204_vm10  ;;  %vm3212_vm10 = vcmp.le.s32.totalorder %v2658_v1, 10  ;;  %v902_v17 = vsel %vm2767_vm1, %v1841_v24, -inf  ;;  %v936_v20 = vmax.f32 %v891_v9, %v895_v14  ;;  %v903_v21 = vsel %vm2767_vm1, %v1844_v25, -inf }
  0xd1   : > { %vm2817_vm9 = vmand %vm3212_vm10, %vm802_vm3  ;;  %v923_v24 = vmax.f32 %v921_v41, %v898_v12  ;;  %vm3218_vm3 = vcmp.le.s32.totalorder %v2658_v1, 12  ;;  %v904_v48 = vsel %vm2789_vm15, %v1847_v26, -inf  ;;  %v905_v35 = vsel %vm2789_vm15, %v1864_v28, -inf }
  0xd2   : > { %vm2831_vm4 = vmand %vm3215_vm6, %vm803_vm5  ;;  %v938_v25 = vmax.f32 %v936_v20, %v899_v16  ;;  %vm3222_vm5 = vcmp.le.s32.totalorder %v2658_v1, 13  ;;  %v907_v26 = vsel %vm2803_vm0, %v1895_v33, -inf  ;;  %v924_v54 = vmax.f32 %v922_v52, %v900_v40 }
  0xd3   : > { %vm2845_vm14 = vmand %vm3218_vm3, %vm804_vm12  ;;  %v925_v29 = vmax.f32 %v923_v24, %v902_v17  ;;  %vm3225_vm12 = vcmp.le.s32.totalorder %v2658_v1, 14  ;;  %v908_v60 = vsel %vm2817_vm9, %v1945_v44, -inf  ;;  %v910_v28 = vsel %vm2831_vm4, %v1974_v51, -inf }
  0xd4   : > { %vm2859_vm1 = vmand %vm3222_vm5, %vm3221_vm11  ;;  %v939_v36 = vmax.f32 %v937_v62, %v901_v47  ;;  %v940_v33 = vmax.f32 %v938_v25, %v903_v21  ;;  %vm3228_vm15 = vcmp.le.s32.totalorder %v2658_v1, 15  ;;  %v909_v18 = vsel %vm2817_vm9, %v1971_v50, -inf }
  0xd5   : > { %vm2873_vm13 = vmand %vm3225_vm12, %vm806_vm7  ;;  %v911_v44 = vsel %vm2831_vm4, %v1999_v57, -inf  ;;  %v926_v27 = vmax.f32 %v924_v54, %v904_v48  ;;  %v927_v51 = vmax.f32 %v925_v29, %v906_v22  ;;  %v912_v37 = vsel %vm2845_vm14, %v2002_v58, -inf }
  0xd6   : > { %vm2887_vm0 = vmand %vm3228_vm15, %vm807_vm2  ;;  %v914_v1 = vsel %vm2859_vm1, %v2026_v5, -inf  ;;  %v941_v59 = vmax.f32 %v939_v36, %v905_v35  ;;  %v942_v13 = vmax.f32 %v940_v33, %v907_v26  ;;  %v913_v50 = vsel %vm2845_vm14, %v2023_v0, -inf }
  0xd7   : > { %v915_v57 = vsel %vm2859_vm1, %v2047_v30, -inf  ;;  %v928_v42 = vmax.f32 %v926_v27, %v908_v60  ;;  %v929_v43 = vmax.f32 %v927_v51, %v910_v28  ;;  %v916_v58 = vsel %vm2873_vm13, %v2050_v31, -inf }
  0xd8   : > { %v918_v5 = vsel %vm2887_vm0, %v2072_v39, -inf  ;;  %v943_v6 = vmax.f32 %v941_v59, %v909_v18  ;;  %v944_v9 = vmax.f32 %v942_v13, %v911_v44  ;;  %v917_v0 = vsel %vm2873_vm13, %v2069_v38, -inf }
  0xd9   : > { %v919_v30 = vsel %vm2887_vm0, %v2113_v61, -inf  ;;  %v930_v11 = vmax.f32 %v928_v42, %v912_v37  ;;  %v931_v14 = vmax.f32 %v929_v43, %v914_v1  ;;  %vm3231_vm7 = vnez %v3097_v63 }
  0xda   : > { %v945_v7 = vmax.f32 %v943_v6, %v913_v50  ;;  %v946_v10 = vmax.f32 %v944_v9, %v915_v57  ;;  %vm3232_vm2 = vnez %v3104_v8  ;;  %vm3233_vm10 = vnez %v3095_v2 }
  0xdb   : > { %v932_v12 = vmax.f32 %v930_v11, %v916_v58  ;;  %v933_v31 = vmax.f32 %v931_v14, %v918_v5  ;;  %vm3234_vm9 = vnez %v3099_v23  ;;  %vm3235_vm6 = vnez %v3106_v4 }
  0xdc   : > { %v947_v15 = vmax.f32 %v945_v7, %v917_v0  ;;  %v948_v32 = vmax.f32 %v946_v10, %v919_v30  ;;  %v962_v52 = vstv %s961_s27  ;;  %v978_v24 = vstv %s977_s14 }
  0xdd   : > { %v934_v39 = vmax.f32 %v932_v12, %v933_v31  ;;  %v993_v62 = vstv %s992_s22  ;;  %vm979_vm4 = vcmp.eq.s32.totalorder %v978_v24, 1 }
  0xde   : > { %v949_v16 = vmax.f32 %v947_v15, %v948_v32  ;;  %vm994_vm3 = vcmp.eq.s32.totalorder %v993_v62, 1 }
  0xdf   : > { %v952_v34 = vsel %vm2187_vm8, %v934_v39, -inf  ;;  %v968_v38 = vsel %vm3231_vm7, %v934_v39, -inf  ;;  %v983_v61 = vsel %vm3232_vm2, %v934_v39, -inf  ;;  %vm963_vm8 = vcmp.eq.s32.totalorder %v962_v52, 1 }
  0xe0   : > { %v953_v41 = vsel %vm3233_vm10, %v949_v16, -inf  ;;  %v969_v19 = vsel %vm3234_vm9, %v949_v16, -inf  ;;  %v984_v40 = vsel %vm3235_vm6, %v949_v16, -inf }
  0xe1   : > { %v954_v17 = vmax.f32 %v952_v34, %v953_v41  ;;  %v970_v45 = vmax.f32 %v968_v38, %v969_v19  ;;  %v985_v56 = vmax.f32 %v983_v61, %v984_v40 }
  0xe3   : > { %v955_v20 = vrot.slane %v954_v17, 4  ;;  %v971_v63 = vrot.slane %v970_v45, 4  ;;  %v986_v8 = vrot.slane %v985_v56, 4 }
  0xe5   : > { %v956_v2 = vmax.f32 %v954_v17, %v955_v20  ;;  %v972_v49 = vmax.f32 %v970_v45, %v971_v63  ;;  %v987_v47 = vmax.f32 %v985_v56, %v986_v8 }
  0xe7   : > { %v957_v23 = vrot.slane %v956_v2, 2  ;;  %v973_v4 = vrot.slane %v972_v49, 2  ;;  %v988_v21 = vrot.slane %v987_v47, 2 }
  0xe9   : > { %v958_v55 = vmax.f32 %v956_v2, %v957_v23  ;;  %v974_v48 = vmax.f32 %v972_v49, %v973_v4  ;;  %v989_v22 = vmax.f32 %v987_v47, %v988_v21 }
  0xeb   : > { %v959_v25 = vrot.slane %v958_v55, 1  ;;  %v975_v53 = vrot.slane %v974_v48, 1  ;;  %v990_v35 = vrot.slane %v989_v22, 1 }
  0xed   : > { %v960_v26 = vmax.f32 %v958_v55, %v959_v25  ;;  %v976_v54 = vmax.f32 %v974_v48, %v975_v53  ;;  %v991_v29 = vmax.f32 %v989_v22, %v990_v35 }
  0xef   : > { %v964_v3 = vsel %vm963_vm8, 0.0, %v960_v26  ;;  %v980_v60 = vsel %vm979_vm4, 0.0, %v976_v54  ;;  %v995_v28 = vsel %vm994_vm3, 0.0, %v991_v29 }
  0xf0   : > { %1173 = vst [vmem:[%s2301_s25 + $0x8] sm:$0x1] %v964_v3  ;;  %1174 = vst [vmem:[%s2301_s25 + $0x9] sm:$0x1] %v980_v60 }
  0xf1   : > { %1175 = vst [vmem:[%s2301_s25 + $0xa] sm:$0x1] %v995_v28 }
  0xf2   : > { %1386 = shalt.err (!%p1383_p6)
}
  0xf3   : > { %s1387_s25 = scalar_lea.hbm %s2944_s16, 192  ;;  %s1391_s29 = scalar_lea.hbm %s3010_s2, 1152 }
  0xf4   : > { %p1388_p9 = scmp.ne.s32.totalorder %s2944_s16, %s1387_s25  ;;  %p1392_p3 = scmp.lt.u32.totalorder %s2944_s16, %s3010_s2 }
  0xf5   : > { %p1393_p5 = scmp.lt.u32.totalorder %s1391_s29, %s1387_s25  ;;  %p1395_p0 = scmp.lt.u32.totalorder %s1387_s25, %s2944_s16 }
  0xf6   : > { %p1389_p13 = pnand %p1388_p9, %p3237_p12 }
  0xf7   : > { %p1394_p2 = por %p1393_p5, %p1392_p3 }
  0xf8   : > { %p1390_p1 = pneg %p1389_p13 }
  0xf9   : > { %p1396_p4 = por %p1395_p0, %p1394_p2 }
  0xfb   : > { %p1397_p10 = pnand %p1396_p4, %p1390_p1 }
  0xfd   : > { %1400 = shalt.err (!%p1397_p10)
}
  0xfe   : > { %s1488_s3 = smov 64   ;;  %s1489_s13 = smov 4  }
  0xff   : > { %1242 = dma.vmem_to_hbm [thread:$0]  (%p3237_p12), %s2946_s6, 192, %s2944_s16, %s2953_s15, %s1488_s3, %s1488_s3, %s1489_s13  }
 0x100 PF: > { %p1255_p11 = scmp.ge.s32.totalorder %s1481_s26, 2  ;;  %s1027_s27 = sand.u32 1, %s1449_s19  }
 0x101   : > { %p3238_p7 = scmp.ne.s32.totalorder %s3030_s12, 0  ;;  %s1028_s14 = scalar_lea.sflag [#allocation6], %s1027_s27 }
 0x103   : > { %p1251_p8 = pnand %p1255_p11, %p3238_p7 }
 0x105   : > { %1444 = dma.done.wait (!%p1251_p8), %s1028_s14, 192  }
 0x106   : > { %1446 = vsyncadd (!%p1251_p8), %s1028_s14, 4294967104  ;;  %s22_s26 = sadd.s32 1, %s1481_s26   ;;  %s3239_s10 = sld [smem:[#allocation13_spill]] }
 0x107   : > { %p19_p6 = scmp.ge.s32.totalorder %s22_s26, 8   ;;  %s3240_s24 = sld [smem:[#allocation16_spill]] }
 0x108   : > { %s3241_s0 = sld [smem:[#allocation14_spill]]  ;;  %s3242_s25 = sld [smem:[#allocation15_spill]] }
 0x109   : > { %s3243_s19 = smov %s1453_s20  ;;  %s3244_s20 = smov %s1457_s21 }
 0x10a   : > { %s3245_s21 = smov %s1586_s9  ;;  %s3246_s22 = smov %s1465_s23 }
 0x10b   :  { %21 = sbr.rel (!%p19_p6) target bundleno = 20 (0x14), region = 71 }
 0x10c   : > { %s3247_s23 = smov %s3239_s10 }
 0x112   :  { %1033 = vsyncpa [#allocation5], 1 }
 0x113   :  { %1035 = vsyncpa [#allocation5 + $0x1], 1 }
 0x114   :  { %1036 = vsyncpa [#allocation6], 1 }
 0x115   :  { %1038 = vsyncpa [#allocation6 + $0x1], 1 }

</bundles_post_ra>
